<compile_context>
chip_gen: v7x
topology: tpu7x:2x2x1
jax: 0.10.0
libtpu: 0.0.40
codegen_flags: <defaults>
</compile_context>

<pallas_src>
import functools
import math

import jax
import jax.numpy as jnp
import numpy as np
from jax import lax
from jax.experimental import pallas as pl
from jax.experimental.pallas import tpu as pltpu


# ------------------------------- Utilities ----------------------------------
@functools.lru_cache(maxsize=None)
def _vmem_capacity_bytes():
    try:
        return int(pltpu.get_tpu_info().vmem_capacity_bytes)
    except Exception:
        return 64 * 1024 * 1024          # conservative (v7x-sized) default


def _vmem_limit_bytes():
    # 3/4 of physical: ~96 MiB on v5e/v6e (128 MiB), ~48 MiB on v7x (64 MiB).
    return (_vmem_capacity_bytes() * 3) // 4


def _pick_tile(dim, pref, align):
    """Largest divisor of `dim` that is <= pref and a multiple of `align`.

    Falls back to the full dimension (always a legal block: "block == full
    dim") only if no aligned divisor exists -- fixing the old behaviour of
    silently using the full dimension whenever pref did not divide dim.
    """
    if dim <= pref:
        return dim
    start = (pref // align) * align
    for t in range(start, 0, -align):
        if dim % t == 0:
            return t
    return dim


# ----------------------------- Linear kernel --------------------------------
def linear_kernel(x_ref, w_ref, b_ref, o_ref, acc_ref):
    # x: (tm, tk) bf16, w: (tk, tn) bf16, b: (1, tn) f32, acc: (tm, tn) f32
    k = pl.program_id(2)

    @pl.when(k == 0)
    def _():
        acc_ref[...] = jnp.zeros_like(acc_ref)

    acc_ref[...] += jnp.dot(x_ref[...], w_ref[...],
                            preferred_element_type=jnp.float32)

    @pl.when(k == pl.num_programs(2) - 1)
    def _():
        o_ref[...] = (acc_ref[...] + b_ref[...]).astype(o_ref.dtype)


def linear(x2d, w, b, out_dtype, *, tm_pref=512, tn_pref=256, tk_pref=512):
    """y = x2d @ w + b.  x2d / w are bf16 (caller pre-casts); f32 accumulation."""
    M, K = x2d.shape
    N = w.shape[1]
    tm = _pick_tile(M, tm_pref, 8)
    tn = _pick_tile(N, tn_pref, 128)
    tk = _pick_tile(K, tk_pref, 128)
    grid = (M // tm, N // tn, K // tk)
    return pl.pallas_call(
        linear_kernel,
        out_shape=jax.ShapeDtypeStruct((M, N), out_dtype),
        grid_spec=pltpu.PrefetchScalarGridSpec(
            num_scalar_prefetch=0,
            grid=grid,
            in_specs=[
                pl.BlockSpec((tm, tk), lambda i, j, k: (i, k)),
                pl.BlockSpec((tk, tn), lambda i, j, k: (k, j)),
                pl.BlockSpec((1, tn), lambda i, j, k: (0, j)),
            ],
            out_specs=pl.BlockSpec((tm, tn), lambda i, j, k: (i, j)),
            scratch_shapes=[pltpu.VMEM((tm, tn), jnp.float32)],
        ),
        compiler_params=pltpu.CompilerParams(
            dimension_semantics=("parallel", "parallel", "arbitrary"),
            vmem_limit_bytes=_vmem_limit_bytes(),
        ),
    )(x2d, w, b.astype(jnp.float32).reshape(1, N))


# --------------------------- Attention kernel --------------------------------
def make_attn_kernel(n_head, attn_dim):
    def attn_kernel(flag_ref, q_ref, k_ref, v_ref, bias_ref, o_ref,
                    q_sc, m_sc, l_sc, acc_sc):
        # flag_ref: (B*nq*nk,) int32 in SMEM (scalar prefetch)
        # q_ref:    (1, tq, H*D) bf16, already scaled by 1/sqrt(D)
        # k_ref/v_ref: (1, tk, H*D) bf16
        # bias_ref: (1, tq, tk) bf16 additive mask bias (0 or -1e9/sqrt(D))
        # o_ref:    (1, tq, H*D) bf16 (lane-dense output block)
        # q_sc:     (H, tq, D) bf16 -- per-head relayout of Q, once per q tile
        # m_sc/l_sc:(H, tq, 1) f32, acc_sc: (H, tq, D) f32
        ki = pl.program_id(2)

        @pl.when(ki == 0)
        def _():
            m_sc[...] = jnp.full_like(m_sc, -jnp.inf)
            l_sc[...] = jnp.zeros_like(l_sc)
            acc_sc[...] = jnp.zeros_like(acc_sc)
            # Hoist the per-head lane-slice relayout of Q out of the kv loop:
            # the Q block is identical for every ki of this q tile.
            for h in range(n_head):
                q_sc[h] = q_ref[0, :, pl.ds(h * attn_dim, attn_dim)]

        # Per-(b, q-block, k-block) skip flag: 0 => every position of this
        # block is masked (and another block of this q row-block is not).
        flat = (pl.program_id(0) * pl.num_programs(1)
                + pl.program_id(1)) * pl.num_programs(2) + ki
        flag = flag_ref[flat]

        @pl.when(flag != 0)
        def _():
            # Mask bias shared by all heads: loaded/cast once per block.
            bias = bias_ref[0].astype(jnp.float32)                # (tq, tk)
            for h in range(n_head):                               # static unroll
                d0 = h * attn_dim
                q = q_sc[h]                                        # (tq, D) bf16
                k = k_ref[0, :, pl.ds(d0, attn_dim)]               # (tk, D) bf16
                v = v_ref[0, :, pl.ds(d0, attn_dim)]               # (tk, D) bf16

                # QK^T without materializing k.T (contract D axes directly).
                s = lax.dot_general(q, k, (((1,), (1,)), ((), ())),
                                    preferred_element_type=jnp.float32)
                s = s + bias                                       # (tq, tk)

                # Online (flash) softmax update for this head.
                m_prev = m_sc[h]                                   # (tq, 1)
                m_new = jnp.maximum(m_prev, jnp.max(s, axis=-1, keepdims=True))
                alpha = jnp.exp(m_prev - m_new)                    # (tq, 1)
                p = jnp.exp(s - m_new)                             # (tq, tk)
                l_sc[h] = alpha * l_sc[h] + jnp.sum(p, axis=-1, keepdims=True)
                pv = lax.dot_general(p.astype(jnp.bfloat16), v,
                                     (((1,), (0,)), ((), ())),
                                     preferred_element_type=jnp.float32)
                acc_sc[h] = alpha * acc_sc[h] + pv
                m_sc[h] = m_new

        @pl.when(ki == pl.num_programs(2) - 1)
        def _():
            # Deferred normalization: O(tq*D) per head, reciprocal on EUP slot.
            for h in range(n_head):
                inv = pl.reciprocal(l_sc[h], approx=True)          # (tq, 1)
                o_ref[0, :, pl.ds(h * attn_dim, attn_dim)] = (
                    acc_sc[h] * inv).astype(o_ref.dtype)

    return attn_kernel


def attention(q, k, v, mask, *, n_head, attn_dim, mask_value,
              tq_pref=None, tk_pref=256):
    """Flash-style MHA over (B, L, H*D) bf16 inputs; heads split in-kernel."""
    B, Lq, HD = q.shape
    Lk = k.shape[1]
    if tq_pref is None:
        # v5e/v6e (128 MiB VMEM): tq up to 1024; v7x (64 MiB): cap at 512.
        # Budget accounts for the 128-lane padding of the (H, tq, 1) scratch.
        tq_pref = 1024 if _vmem_capacity_bytes() >= (96 << 20) else 512
    tq = _pick_tile(Lq, tq_pref, 8)
    tk = _pick_tile(Lk, tk_pref, 128)
    nq, nk = Lq // tq, Lk // tk

    # Additive mask bias (matches masked_fill(-1e9) followed by /sqrt(D)),
    # bf16 = half the DMA of an f32 mask stream.
    unmasked = (mask != 0)
    bias = jnp.where(unmasked, jnp.float32(0.0),
                     jnp.float32(mask_value)).astype(jnp.bfloat16)

    # Per-(b, q-block, k-block) "any unmasked entry" flags, scalar-prefetched
    # into SMEM so fully-masked KV blocks skip QK^T / exp / PV entirely.  If a
    # whole q row-block has no unmasked key anywhere, keep all of its blocks
    # (preserves the reference's uniform-average behaviour for such rows).
    blk_any = jnp.any(unmasked.reshape(B, nq, tq, nk, tk), axis=(2, 4))
    row_any = jnp.any(blk_any, axis=-1, keepdims=True)
    flags = jnp.where(row_any, blk_any, True).astype(jnp.int32).reshape(-1)

    grid = (B, nq, nk)
    return pl.pallas_call(
        make_attn_kernel(n_head, attn_dim),
        out_shape=jax.ShapeDtypeStruct((B, Lq, HD), jnp.bfloat16),
        grid_spec=pltpu.PrefetchScalarGridSpec(
            num_scalar_prefetch=1,
            grid=grid,
            in_specs=[
                pl.BlockSpec((1, tq, HD), lambda b, qi, ki, f: (b, qi, 0)),
                pl.BlockSpec((1, tk, HD), lambda b, qi, ki, f: (b, ki, 0)),
                pl.BlockSpec((1, tk, HD), lambda b, qi, ki, f: (b, ki, 0)),
                pl.BlockSpec((1, tq, tk), lambda b, qi, ki, f: (b, qi, ki)),
            ],
            out_specs=pl.BlockSpec((1, tq, HD), lambda b, qi, ki, f: (b, qi, 0)),
            scratch_shapes=[
                pltpu.VMEM((n_head, tq, attn_dim), jnp.bfloat16),  # Q per head
                pltpu.VMEM((n_head, tq, 1), jnp.float32),          # running max
                pltpu.VMEM((n_head, tq, 1), jnp.float32),          # running sum
                pltpu.VMEM((n_head, tq, attn_dim), jnp.float32),   # accumulator
            ],
        ),
        compiler_params=pltpu.CompilerParams(
            dimension_semantics=("parallel", "parallel", "arbitrary"),
            vmem_limit_bytes=_vmem_limit_bytes(),
        ),
    )(flags, q, k, v, bias)


# ------------------------------ Full forward ---------------------------------
def multi_head_attention(params, input_q, input_k, input_v, mask,
                         *, n_head, attn_dim, fused_qkv=False):
    B, Lq, E = input_q.shape
    Lk = input_k.shape[1]
    HD = n_head * attn_dim
    scale = 1.0 / math.sqrt(attn_dim)

    # bf16 weights for the MXU; fold 1/sqrt(D) into the Q projection (weights
    # AND bias) so no per-score scaling is needed at attention time.
    wq = (params["wq_w"] * scale).astype(jnp.bfloat16)
    bq = params["wq_b"] * scale
    wk = params["wk_w"].astype(jnp.bfloat16)
    wv = params["wv_w"].astype(jnp.bfloat16)
    wo = params["wo_w"].astype(jnp.bfloat16)

    # Pre-cast activations to bf16: halves the projection kernels' input DMA.
    xq = input_q.reshape(B * Lq, E).astype(jnp.bfloat16)

    if fused_qkv:
        # Self-attention fast path: single pass over the activations.
        w_qkv = jnp.concatenate([wq, wk, wv], axis=1)               # (E, 3*HD)
        b_qkv = jnp.concatenate([bq, params["wk_b"], params["wv_b"]])
        qkv = linear(xq, w_qkv, b_qkv, jnp.bfloat16)                # (B*Lq, 3HD)
        q, k, v = qkv[:, :HD], qkv[:, HD:2 * HD], qkv[:, 2 * HD:]
        Lk = Lq
    else:
        xk = input_k.reshape(B * Lk, E).astype(jnp.bfloat16)
        xv = input_v.reshape(B * Lk, E).astype(jnp.bfloat16)
        q = linear(xq, wq, bq, jnp.bfloat16)
        k = linear(xk, wk, params["wk_b"], jnp.bfloat16)
        v = linear(xv, wv, params["wv_b"], jnp.bfloat16)

    # Free reshapes only -- heads are split inside the attention kernel, so no
    # (B,L,H,D)<->(B,H,L,D) transposes round-trip through HBM.
    q = q.reshape(B, Lq, HD)
    k = k.reshape(B, Lk, HD)
    v = v.reshape(B, Lk, HD)

    ctx = attention(q, k, v, mask, n_head=n_head, attn_dim=attn_dim,
                    mask_value=-1e9 * scale)                        # (B, Lq, HD)

    out = linear(ctx.reshape(B * Lq, HD), wo, params["wo_b"], jnp.float32)
    return out.reshape(B, Lq, E)


# --------------------------- Pure-JAX reference ------------------------------
def reference(params, input_q, input_k, input_v, mask, *, n_head, attn_dim):
    B, Lq, E = input_q.shape
    Lk = input_k.shape[1]
    q = (input_q @ params["wq_w"] + params["wq_b"]).reshape(B, Lq, n_head, attn_dim).transpose(0, 2, 1, 3)
    k = (input_k @ params["wk_w"] + params["wk_b"]).reshape(B, Lk, n_head, attn_dim).transpose(0, 2, 1, 3)
    v = (input_v @ params["wv_w"] + params["wv_b"]).reshape(B, Lk, n_head, attn_dim).transpose(0, 2, 1, 3)
    s = jnp.einsum("bhqd,bhkd->bhqk", q, k)
    s = jnp.where(mask[:, None, :, :] == 0, -1e9, s)
    p = jax.nn.softmax(s / math.sqrt(attn_dim), axis=-1)
    o = jnp.einsum("bhqk,bhkd->bhqd", p, v).transpose(0, 2, 1, 3).reshape(B, Lq, -1)
    return o @ params["wo_w"] + params["wo_b"]


# ---------------------------------- Main --------------------------------------
if __name__ == "__main__":
    # Small shapes consistent with the module (emb_dim, attn_dim * n_head).
    B, L, E = 2, 8, 32
    n_head, attn_dim = 4, 8
    HD = n_head * attn_dim

    key = jax.random.PRNGKey(0)
    keys = jax.random.split(key, 12)

    def init_linear(kw, kb, fan_in, fan_out):
        w = jax.random.normal(kw, (fan_in, fan_out), jnp.float32) * 0.05
        b = jax.random.normal(kb, (fan_out,), jnp.float32) * 0.05
        return w, b

    wq_w, wq_b = init_linear(keys[0], keys[1], E, HD)
    wk_w, wk_b = init_linear(keys[2], keys[3], E, HD)
    wv_w, wv_b = init_linear(keys[4], keys[5], E, HD)
    wo_w, wo_b = init_linear(keys[6], keys[7], HD, E)
    params = dict(wq_w=wq_w, wq_b=wq_b, wk_w=wk_w, wk_b=wk_b,
                  wv_w=wv_w, wv_b=wv_b, wo_w=wo_w, wo_b=wo_b)

    input_q = jax.random.normal(keys[8], (B, L, E), jnp.float32)
    input_k = jax.random.normal(keys[9], (B, L, E), jnp.float32)
    input_v = jax.random.normal(keys[10], (B, L, E), jnp.float32)
    # binary mask (batch, query_len, key_len); 0 = masked out
    mask = (jax.random.uniform(keys[11], (B, L, L)) > 0.2).astype(jnp.float32)

    # Cross-attention path (three distinct inputs, three projections).
    mha = jax.jit(functools.partial(multi_head_attention,
                                    n_head=n_head, attn_dim=attn_dim,
                                    fused_qkv=False))
    out = jax.block_until_ready(mha(params, input_q, input_k, input_v, mask))
    ref = reference(params, input_q, input_k, input_v, mask,
                    n_head=n_head, attn_dim=attn_dim)
    # bf16 MXU operands + approximate reciprocal vs an f32 reference -> ~1e-2.
    np.testing.assert_allclose(np.asarray(out), np.asarray(ref),
                               rtol=2e-2, atol=2e-2)

    # Self-attention fast path (fused (E, 3*H*D) QKV projection).
    mha_self = jax.jit(functools.partial(multi_head_attention,
                                         n_head=n_head, attn_dim=attn_dim,
                                         fused_qkv=True))
    out_s = jax.block_until_ready(
        mha_self(params, input_q, input_q, input_q, mask))
    ref_s = reference(params, input_q, input_q, input_q, mask,
                      n_head=n_head, attn_dim=attn_dim)
    np.testing.assert_allclose(np.asarray(out_s), np.asarray(ref_s),
                               rtol=2e-2, atol=2e-2)

    print("KERNEL_OK")
</pallas_src>

<mosaic_0001>
module attributes {stable_mosaic.version = 11 : i64} {
  func.func @linear_kernel(%arg0: i32, %arg1: i32, %arg2: i32, %arg3: memref<16x32xbf16, #tpu.memory_space<vmem>>, %arg4: memref<32x32xbf16, #tpu.memory_space<vmem>>, %arg5: memref<1x32xf32, #tpu.memory_space<vmem>>, %arg6: memref<16x32xbf16, #tpu.memory_space<vmem>>, %arg7: memref<16x32xf32, #tpu.memory_space<vmem>>) attributes {dimension_semantics = [#tpu.dimension_semantics<parallel>, #tpu.dimension_semantics<parallel>, #tpu.dimension_semantics<arbitrary>], iteration_bounds = array<i64: 1, 1, 1>, scalar_prefetch = 0 : i64, scratch_operands = 1 : i64, tpu.core_type = #tpu.core_type<tc>, window_params = [{transform_indices = @transform_0, window_bounds = array<i64: 16, 32>}, {transform_indices = @transform_1, window_bounds = array<i64: 32, 32>}, {transform_indices = @transform_2, window_bounds = array<i64: 1, 32>}, {transform_indices = @transform_3, window_bounds = array<i64: 16, 32>}]} {
    %c0_i32 = arith.constant 0 : i32
    %0 = arith.cmpi eq, %arg2, %c0_i32 : i32
    %1 = arith.extui %0 : i1 to i32
    %c0_i32_0 = arith.constant 0 : i32
    %2 = arith.cmpi ne, %1, %c0_i32_0 : i32
    scf.if %2 {
      %cst_10 = arith.constant 0.000000e+00 : f32
      %12 = vector.broadcast %cst_10 : f32 to vector<16x32xf32>
      %c0_11 = arith.constant 0 : index
      %c0_12 = arith.constant 0 : index
      %13 = vector.load %arg7[%c0_11, %c0_12] : memref<16x32xf32, #tpu.memory_space<vmem>>, vector<16x32xf32>
      tpu.vector_store %arg7[%c0_11, %c0_12], %12 {strides = array<i32>} : memref<16x32xf32, #tpu.memory_space<vmem>>, vector<16x32xf32>,
    } else {
    }
    %c0 = arith.constant 0 : index
    %c0_1 = arith.constant 0 : index
    %3 = vector.load %arg7[%c0, %c0_1] : memref<16x32xf32, #tpu.memory_space<vmem>>, vector<16x32xf32>
    %c0_2 = arith.constant 0 : index
    %c0_3 = arith.constant 0 : index
    %4 = vector.load %arg3[%c0_2, %c0_3] : memref<16x32xbf16, #tpu.memory_space<vmem>>, vector<16x32xbf16>
    %c0_4 = arith.constant 0 : index
    %c0_5 = arith.constant 0 : index
    %5 = vector.load %arg4[%c0_4, %c0_5] : memref<32x32xbf16, #tpu.memory_space<vmem>>, vector<32x32xbf16>
    %cst = arith.constant dense<0.000000e+00> : vector<16x32xf32>
    %6 = tpu.matmul %4, %5, %cst {dimension_numbers = #tpu.dot_dimension_numbers<[1], [0], [0], [1], [0, 0, 1, 1], [], []>} : vector<16x32xbf16>, vector<32x32xbf16>, vector<16x32xf32> -> vector<16x32xf32>
    %7 = arith.addf %3, %6 : vector<16x32xf32>
    %c0_6 = arith.constant 0 : index
    %c0_7 = arith.constant 0 : index
    %8 = vector.load %arg7[%c0_6, %c0_7] : memref<16x32xf32, #tpu.memory_space<vmem>>, vector<16x32xf32>
    tpu.vector_store %arg7[%c0_6, %c0_7], %7 {strides = array<i32>} : memref<16x32xf32, #tpu.memory_space<vmem>>, vector<16x32xf32>,
    %c0_i32_8 = arith.constant 0 : i32
    %9 = arith.cmpi eq, %arg2, %c0_i32_8 : i32
    %10 = arith.extui %9 : i1 to i32
    %c0_i32_9 = arith.constant 0 : i32
    %11 = arith.cmpi ne, %10, %c0_i32_9 : i32
    scf.if %11 {
      %c0_10 = arith.constant 0 : index
      %c0_11 = arith.constant 0 : index
      %12 = vector.load %arg7[%c0_10, %c0_11] : memref<16x32xf32, #tpu.memory_space<vmem>>, vector<16x32xf32>
      %c0_12 = arith.constant 0 : index
      %c0_13 = arith.constant 0 : index
      %13 = vector.load %arg5[%c0_12, %c0_13] : memref<1x32xf32, #tpu.memory_space<vmem>>, vector<1x32xf32>
      %14 = vector.broadcast %13 : vector<1x32xf32> to vector<16x32xf32>
      %15 = arith.addf %12, %14 : vector<16x32xf32>
      %16 = arith.truncf %15 : vector<16x32xf32> to vector<16x32xbf16>
      %c0_14 = arith.constant 0 : index
      %c0_15 = arith.constant 0 : index
      %17 = vector.load %arg6[%c0_14, %c0_15] : memref<16x32xbf16, #tpu.memory_space<vmem>>, vector<16x32xbf16>
      tpu.vector_store %arg6[%c0_14, %c0_15], %16 {strides = array<i32>} : memref<16x32xbf16, #tpu.memory_space<vmem>>, vector<16x32xbf16>,
    } else {
    }
    return
  }
  func.func @transform_0(%arg0: i32, %arg1: i32, %arg2: i32) -> (i32, i32) {
    %c0_i32 = arith.constant 0 : i32
    return %arg0, %arg2 : i32, i32
  }
  func.func @transform_1(%arg0: i32, %arg1: i32, %arg2: i32) -> (i32, i32) {
    %c0_i32 = arith.constant 0 : i32
    return %arg2, %arg1 : i32, i32
  }
  func.func @transform_2(%arg0: i32, %arg1: i32, %arg2: i32) -> (i32, i32) {
    %c0_i32 = arith.constant 0 : i32
    %c0_i32_0 = arith.constant 0 : i32
    return %c0_i32, %arg1 : i32, i32
  }
  func.func @transform_3(%arg0: i32, %arg1: i32, %arg2: i32) -> (i32, i32) {
    %c0_i32 = arith.constant 0 : i32
    return %arg0, %arg1 : i32, i32
  }
}

module attributes {stable_mosaic.version = 11 : i64} {
  func.func @linear_kernel(%arg0: i32, %arg1: i32, %arg2: i32, %arg3: memref<16x32xbf16, #tpu.memory_space<vmem>>, %arg4: memref<32x32xbf16, #tpu.memory_space<vmem>>, %arg5: memref<1x32xf32, #tpu.memory_space<vmem>>, %arg6: memref<16x32xf32, #tpu.memory_space<vmem>>, %arg7: memref<16x32xf32, #tpu.memory_space<vmem>>) attributes {dimension_semantics = [#tpu.dimension_semantics<parallel>, #tpu.dimension_semantics<parallel>, #tpu.dimension_semantics<arbitrary>], iteration_bounds = array<i64: 1, 1, 1>, scalar_prefetch = 0 : i64, scratch_operands = 1 : i64, tpu.core_type = #tpu.core_type<tc>, window_params = [{transform_indices = @transform_0, window_bounds = array<i64: 16, 32>}, {transform_indices = @transform_1, window_bounds = array<i64: 32, 32>}, {transform_indices = @transform_2, window_bounds = array<i64: 1, 32>}, {transform_indices = @transform_3, window_bounds = array<i64: 16, 32>}]} {
    %c0_i32 = arith.constant 0 : i32
    %0 = arith.cmpi eq, %arg2, %c0_i32 : i32
    %1 = arith.extui %0 : i1 to i32
    %c0_i32_0 = arith.constant 0 : i32
    %2 = arith.cmpi ne, %1, %c0_i32_0 : i32
    scf.if %2 {
      %cst_10 = arith.constant 0.000000e+00 : f32
      %12 = vector.broadcast %cst_10 : f32 to vector<16x32xf32>
      %c0_11 = arith.constant 0 : index
      %c0_12 = arith.constant 0 : index
      %13 = vector.load %arg7[%c0_11, %c0_12] : memref<16x32xf32, #tpu.memory_space<vmem>>, vector<16x32xf32>
      tpu.vector_store %arg7[%c0_11, %c0_12], %12 {strides = array<i32>} : memref<16x32xf32, #tpu.memory_space<vmem>>, vector<16x32xf32>,
    } else {
    }
    %c0 = arith.constant 0 : index
    %c0_1 = arith.constant 0 : index
    %3 = vector.load %arg7[%c0, %c0_1] : memref<16x32xf32, #tpu.memory_space<vmem>>, vector<16x32xf32>
    %c0_2 = arith.constant 0 : index
    %c0_3 = arith.constant 0 : index
    %4 = vector.load %arg3[%c0_2, %c0_3] : memref<16x32xbf16, #tpu.memory_space<vmem>>, vector<16x32xbf16>
    %c0_4 = arith.constant 0 : index
    %c0_5 = arith.constant 0 : index
    %5 = vector.load %arg4[%c0_4, %c0_5] : memref<32x32xbf16, #tpu.memory_space<vmem>>, vector<32x32xbf16>
    %cst = arith.constant dense<0.000000e+00> : vector<16x32xf32>
    %6 = tpu.matmul %4, %5, %cst {dimension_numbers = #tpu.dot_dimension_numbers<[1], [0], [0], [1], [0, 0, 1, 1], [], []>} : vector<16x32xbf16>, vector<32x32xbf16>, vector<16x32xf32> -> vector<16x32xf32>
    %7 = arith.addf %3, %6 : vector<16x32xf32>
    %c0_6 = arith.constant 0 : index
    %c0_7 = arith.constant 0 : index
    %8 = vector.load %arg7[%c0_6, %c0_7] : memref<16x32xf32, #tpu.memory_space<vmem>>, vector<16x32xf32>
    tpu.vector_store %arg7[%c0_6, %c0_7], %7 {strides = array<i32>} : memref<16x32xf32, #tpu.memory_space<vmem>>, vector<16x32xf32>,
    %c0_i32_8 = arith.constant 0 : i32
    %9 = arith.cmpi eq, %arg2, %c0_i32_8 : i32
    %10 = arith.extui %9 : i1 to i32
    %c0_i32_9 = arith.constant 0 : i32
    %11 = arith.cmpi ne, %10, %c0_i32_9 : i32
    scf.if %11 {
      %c0_10 = arith.constant 0 : index
      %c0_11 = arith.constant 0 : index
      %12 = vector.load %arg7[%c0_10, %c0_11] : memref<16x32xf32, #tpu.memory_space<vmem>>, vector<16x32xf32>
      %c0_12 = arith.constant 0 : index
      %c0_13 = arith.constant 0 : index
      %13 = vector.load %arg5[%c0_12, %c0_13] : memref<1x32xf32, #tpu.memory_space<vmem>>, vector<1x32xf32>
      %14 = vector.broadcast %13 : vector<1x32xf32> to vector<16x32xf32>
      %15 = arith.addf %12, %14 : vector<16x32xf32>
      %c0_14 = arith.constant 0 : index
      %c0_15 = arith.constant 0 : index
      %16 = vector.load %arg6[%c0_14, %c0_15] : memref<16x32xf32, #tpu.memory_space<vmem>>, vector<16x32xf32>
      tpu.vector_store %arg6[%c0_14, %c0_15], %15 {strides = array<i32>} : memref<16x32xf32, #tpu.memory_space<vmem>>, vector<16x32xf32>,
    } else {
    }
    return
  }
  func.func @transform_0(%arg0: i32, %arg1: i32, %arg2: i32) -> (i32, i32) {
    %c0_i32 = arith.constant 0 : i32
    return %arg0, %arg2 : i32, i32
  }
  func.func @transform_1(%arg0: i32, %arg1: i32, %arg2: i32) -> (i32, i32) {
    %c0_i32 = arith.constant 0 : i32
    return %arg2, %arg1 : i32, i32
  }
  func.func @transform_2(%arg0: i32, %arg1: i32, %arg2: i32) -> (i32, i32) {
    %c0_i32 = arith.constant 0 : i32
    %c0_i32_0 = arith.constant 0 : i32
    return %c0_i32, %arg1 : i32, i32
  }
  func.func @transform_3(%arg0: i32, %arg1: i32, %arg2: i32) -> (i32, i32) {
    %c0_i32 = arith.constant 0 : i32
    return %arg0, %arg1 : i32, i32
  }
}

module attributes {stable_mosaic.version = 11 : i64} {
  func.func @attn_kernel(%arg0: i32, %arg1: i32, %arg2: i32, %arg3: memref<2xi32, #tpu.memory_space<smem>>, %arg4: memref<1x8x32xbf16, #tpu.memory_space<vmem>>, %arg5: memref<1x8x32xbf16, #tpu.memory_space<vmem>>, %arg6: memref<1x8x32xbf16, #tpu.memory_space<vmem>>, %arg7: memref<1x8x8xbf16, #tpu.memory_space<vmem>>, %arg8: memref<1x8x32xbf16, #tpu.memory_space<vmem>>, %arg9: memref<4x8x8xbf16, #tpu.memory_space<vmem>>, %arg10: memref<4x8x1xf32, #tpu.memory_space<vmem>>, %arg11: memref<4x8x1xf32, #tpu.memory_space<vmem>>, %arg12: memref<4x8x8xf32, #tpu.memory_space<vmem>>) attributes {dimension_semantics = [#tpu.dimension_semantics<parallel>, #tpu.dimension_semantics<parallel>, #tpu.dimension_semantics<arbitrary>], iteration_bounds = array<i64: 2, 1, 1>, scalar_prefetch = 1 : i64, scratch_operands = 4 : i64, tpu.core_type = #tpu.core_type<tc>, window_params = [{transform_indices = @transform_0, window_bounds = array<i64: 1, 8, 32>}, {transform_indices = @transform_1, window_bounds = array<i64: 1, 8, 32>}, {transform_indices = @transform_2, window_bounds = array<i64: 1, 8, 32>}, {transform_indices = @transform_3, window_bounds = array<i64: 1, 8, 8>}, {transform_indices = @transform_4, window_bounds = array<i64: 1, 8, 32>}]} {
    %c0_i32 = arith.constant 0 : i32
    %0 = arith.cmpi eq, %arg2, %c0_i32 : i32
    %1 = arith.extui %0 : i1 to i32
    %c0_i32_0 = arith.constant 0 : i32
    %2 = arith.cmpi ne, %1, %c0_i32_0 : i32
    scf.if %2 {
      %cst = arith.constant 0xFF800000 : f32
      %15 = vector.broadcast %cst : f32 to vector<4x8x1xf32>
      %c0 = arith.constant 0 : index
      %c0_6 = arith.constant 0 : index
      %c0_7 = arith.constant 0 : index
      %16 = vector.load %arg10[%c0, %c0_6, %c0_7] : memref<4x8x1xf32, #tpu.memory_space<vmem>>, vector<4x8x1xf32>
      tpu.vector_store %arg10[%c0, %c0_6, %c0_7], %15 {strides = array<i32>} : memref<4x8x1xf32, #tpu.memory_space<vmem>>, vector<4x8x1xf32>,
      %cst_8 = arith.constant 0.000000e+00 : f32
      %17 = vector.broadcast %cst_8 : f32 to vector<4x8x1xf32>
      %c0_9 = arith.constant 0 : index
      %c0_10 = arith.constant 0 : index
      %c0_11 = arith.constant 0 : index
      %18 = vector.load %arg11[%c0_9, %c0_10, %c0_11] : memref<4x8x1xf32, #tpu.memory_space<vmem>>, vector<4x8x1xf32>
      tpu.vector_store %arg11[%c0_9, %c0_10, %c0_11], %17 {strides = array<i32>} : memref<4x8x1xf32, #tpu.memory_space<vmem>>, vector<4x8x1xf32>,
      %cst_12 = arith.constant 0.000000e+00 : f32
      %19 = vector.broadcast %cst_12 : f32 to vector<4x8x8xf32>
      %c0_13 = arith.constant 0 : index
      %c0_14 = arith.constant 0 : index
      %c0_15 = arith.constant 0 : index
      %20 = vector.load %arg12[%c0_13, %c0_14, %c0_15] : memref<4x8x8xf32, #tpu.memory_space<vmem>>, vector<4x8x8xf32>
      tpu.vector_store %arg12[%c0_13, %c0_14, %c0_15], %19 {strides = array<i32>} : memref<4x8x8xf32, #tpu.memory_space<vmem>>, vector<4x8x8xf32>,
      %c0_16 = arith.constant 0 : index
      %c0_17 = arith.constant 0 : index
      %c0_18 = arith.constant 0 : index
      %21 = vector.load %arg4[%c0_16, %c0_17, %c0_18] : memref<1x8x32xbf16, #tpu.memory_space<vmem>>, vector<1x8x8xbf16>
      %22 = vector.shape_cast %21 : vector<1x8x8xbf16> to vector<8x8xbf16>
      %c0_19 = arith.constant 0 : index
      %c0_20 = arith.constant 0 : index
      %c0_21 = arith.constant 0 : index
      %23 = vector.load %arg9[%c0_19, %c0_20, %c0_21] : memref<4x8x8xbf16, #tpu.memory_space<vmem>>, vector<1x8x8xbf16>
      %24 = vector.shape_cast %23 : vector<1x8x8xbf16> to vector<8x8xbf16>
      %25 = vector.shape_cast %22 : vector<8x8xbf16> to vector<1x8x8xbf16>
      tpu.vector_store %arg9[%c0_19, %c0_20, %c0_21], %25 {strides = array<i32>} : memref<4x8x8xbf16, #tpu.memory_space<vmem>>, vector<1x8x8xbf16>,
      %c0_22 = arith.constant 0 : index
      %c0_23 = arith.constant 0 : index
      %c8 = arith.constant 8 : index
      %26 = vector.load %arg4[%c0_22, %c0_23, %c8] : memref<1x8x32xbf16, #tpu.memory_space<vmem>>, vector<1x8x8xbf16>
      %27 = vector.shape_cast %26 : vector<1x8x8xbf16> to vector<8x8xbf16>
      %c1 = arith.constant 1 : index
      %c0_24 = arith.constant 0 : index
      %c0_25 = arith.constant 0 : index
      %28 = vector.load %arg9[%c1, %c0_24, %c0_25] : memref<4x8x8xbf16, #tpu.memory_space<vmem>>, vector<1x8x8xbf16>
      %29 = vector.shape_cast %28 : vector<1x8x8xbf16> to vector<8x8xbf16>
      %30 = vector.shape_cast %27 : vector<8x8xbf16> to vector<1x8x8xbf16>
      tpu.vector_store %arg9[%c1, %c0_24, %c0_25], %30 {strides = array<i32>} : memref<4x8x8xbf16, #tpu.memory_space<vmem>>, vector<1x8x8xbf16>,
      %c0_26 = arith.constant 0 : index
      %c0_27 = arith.constant 0 : index
      %c16 = arith.constant 16 : index
      %31 = vector.load %arg4[%c0_26, %c0_27, %c16] : memref<1x8x32xbf16, #tpu.memory_space<vmem>>, vector<1x8x8xbf16>
      %32 = vector.shape_cast %31 : vector<1x8x8xbf16> to vector<8x8xbf16>
      %c2 = arith.constant 2 : index
      %c0_28 = arith.constant 0 : index
      %c0_29 = arith.constant 0 : index
      %33 = vector.load %arg9[%c2, %c0_28, %c0_29] : memref<4x8x8xbf16, #tpu.memory_space<vmem>>, vector<1x8x8xbf16>
      %34 = vector.shape_cast %33 : vector<1x8x8xbf16> to vector<8x8xbf16>
      %35 = vector.shape_cast %32 : vector<8x8xbf16> to vector<1x8x8xbf16>
      tpu.vector_store %arg9[%c2, %c0_28, %c0_29], %35 {strides = array<i32>} : memref<4x8x8xbf16, #tpu.memory_space<vmem>>, vector<1x8x8xbf16>,
      %c0_30 = arith.constant 0 : index
      %c0_31 = arith.constant 0 : index
      %c24 = arith.constant 24 : index
      %36 = vector.load %arg4[%c0_30, %c0_31, %c24] : memref<1x8x32xbf16, #tpu.memory_space<vmem>>, vector<1x8x8xbf16>
      %37 = vector.shape_cast %36 : vector<1x8x8xbf16> to vector<8x8xbf16>
      %c3 = arith.constant 3 : index
      %c0_32 = arith.constant 0 : index
      %c0_33 = arith.constant 0 : index
      %38 = vector.load %arg9[%c3, %c0_32, %c0_33] : memref<4x8x8xbf16, #tpu.memory_space<vmem>>, vector<1x8x8xbf16>
      %39 = vector.shape_cast %38 : vector<1x8x8xbf16> to vector<8x8xbf16>
      %40 = vector.shape_cast %37 : vector<8x8xbf16> to vector<1x8x8xbf16>
      tpu.vector_store %arg9[%c3, %c0_32, %c0_33], %40 {strides = array<i32>} : memref<4x8x8xbf16, #tpu.memory_space<vmem>>, vector<1x8x8xbf16>,
    } else {
    }
    %c1_i32 = arith.constant 1 : i32
    %3 = arith.muli %arg0, %c1_i32 : i32
    %4 = arith.addi %3, %arg1 : i32
    %c1_i32_1 = arith.constant 1 : i32
    %5 = arith.muli %4, %c1_i32_1 : i32
    %6 = arith.addi %5, %arg2 : i32
    %7 = arith.index_cast %6 : i32 to index
    %8 = memref.load %arg3[%7] : memref<2xi32, #tpu.memory_space<smem>>
    %c0_i32_2 = arith.constant 0 : i32
    %9 = arith.cmpi ne, %8, %c0_i32_2 : i32
    %10 = arith.extui %9 : i1 to i32
    %c0_i32_3 = arith.constant 0 : i32
    %11 = arith.cmpi ne, %10, %c0_i32_3 : i32
    scf.if %11 {
      %c0 = arith.constant 0 : index
      %c0_6 = arith.constant 0 : index
      %c0_7 = arith.constant 0 : index
      %15 = vector.load %arg7[%c0, %c0_6, %c0_7] : memref<1x8x8xbf16, #tpu.memory_space<vmem>>, vector<1x8x8xbf16>
      %16 = vector.shape_cast %15 : vector<1x8x8xbf16> to vector<8x8xbf16>
      %17 = arith.extf %16 : vector<8x8xbf16> to vector<8x8xf32>
      %c0_8 = arith.constant 0 : index
      %c0_9 = arith.constant 0 : index
      %c0_10 = arith.constant 0 : index
      %18 = vector.load %arg9[%c0_8, %c0_9, %c0_10] : memref<4x8x8xbf16, #tpu.memory_space<vmem>>, vector<1x8x8xbf16>
      %19 = vector.shape_cast %18 : vector<1x8x8xbf16> to vector<8x8xbf16>
      %c0_11 = arith.constant 0 : index
      %c0_12 = arith.constant 0 : index
      %c0_13 = arith.constant 0 : index
      %20 = vector.load %arg5[%c0_11, %c0_12, %c0_13] : memref<1x8x32xbf16, #tpu.memory_space<vmem>>, vector<1x8x8xbf16>
      %21 = vector.shape_cast %20 : vector<1x8x8xbf16> to vector<8x8xbf16>
      %c0_14 = arith.constant 0 : index
      %c0_15 = arith.constant 0 : index
      %c0_16 = arith.constant 0 : index
      %22 = vector.load %arg6[%c0_14, %c0_15, %c0_16] : memref<1x8x32xbf16, #tpu.memory_space<vmem>>, vector<1x8x8xbf16>
      %23 = vector.shape_cast %22 : vector<1x8x8xbf16> to vector<8x8xbf16>
      %cst = arith.constant dense<0.000000e+00> : vector<8x8xf32>
      %24 = tpu.matmul %19, %21, %cst {dimension_numbers = #tpu.dot_dimension_numbers<[1], [1], [0], [0], [0, 0, 1, 0], [], []>} : vector<8x8xbf16>, vector<8x8xbf16>, vector<8x8xf32> -> vector<8x8xf32>
      %25 = arith.addf %24, %17 : vector<8x8xf32>
      %c0_17 = arith.constant 0 : index
      %c0_18 = arith.constant 0 : index
      %c0_19 = arith.constant 0 : index
      %26 = vector.load %arg10[%c0_17, %c0_18, %c0_19] : memref<4x8x1xf32, #tpu.memory_space<vmem>>, vector<1x8x1xf32>
      %27 = vector.shape_cast %26 : vector<1x8x1xf32> to vector<8x1xf32>
      %cst_20 = arith.constant dense<0xFF800000> : vector<8xf32>
      %28 = vector.multi_reduction <maximumf>, %25, %cst_20 [1] : vector<8x8xf32> to vector<8xf32>
      %29 = vector.shape_cast %28 : vector<8xf32> to vector<8x1xf32>
      %30 = arith.maximumf %27, %29 : vector<8x1xf32>
      %31 = arith.subf %27, %30 : vector<8x1xf32>
      %32 = math.exp %31 : vector<8x1xf32>
      %33 = vector.broadcast %30 : vector<8x1xf32> to vector<8x8xf32>
      %34 = arith.subf %25, %33 : vector<8x8xf32>
      %35 = math.exp %34 : vector<8x8xf32>
      %c0_21 = arith.constant 0 : index
      %c0_22 = arith.constant 0 : index
      %c0_23 = arith.constant 0 : index
      %36 = vector.load %arg11[%c0_21, %c0_22, %c0_23] : memref<4x8x1xf32, #tpu.memory_space<vmem>>, vector<1x8x1xf32>
      %37 = vector.shape_cast %36 : vector<1x8x1xf32> to vector<8x1xf32>
      %38 = arith.mulf %32, %37 : vector<8x1xf32>
      %cst_24 = arith.constant dense<0.000000e+00> : vector<8xf32>
      %39 = vector.multi_reduction <add>, %35, %cst_24 [1] : vector<8x8xf32> to vector<8xf32>
      %40 = vector.shape_cast %39 : vector<8xf32> to vector<8x1xf32>
      %41 = arith.addf %38, %40 : vector<8x1xf32>
      %c0_25 = arith.constant 0 : index
      %c0_26 = arith.constant 0 : index
      %c0_27 = arith.constant 0 : index
      %42 = vector.load %arg11[%c0_25, %c0_26, %c0_27] : memref<4x8x1xf32, #tpu.memory_space<vmem>>, vector<1x8x1xf32>
      %43 = vector.shape_cast %42 : vector<1x8x1xf32> to vector<8x1xf32>
      %44 = vector.shape_cast %41 : vector<8x1xf32> to vector<1x8x1xf32>
      tpu.vector_store %arg11[%c0_25, %c0_26, %c0_27], %44 {strides = array<i32>} : memref<4x8x1xf32, #tpu.memory_space<vmem>>, vector<1x8x1xf32>,
      %45 = arith.truncf %35 : vector<8x8xf32> to vector<8x8xbf16>
      %cst_28 = arith.constant dense<0.000000e+00> : vector<8x8xf32>
      %46 = tpu.matmul %45, %23, %cst_28 {dimension_numbers = #tpu.dot_dimension_numbers<[1], [0], [0], [1], [0, 0, 1, 1], [], []>} : vector<8x8xbf16>, vector<8x8xbf16>, vector<8x8xf32> -> vector<8x8xf32>
      %c0_29 = arith.constant 0 : index
      %c0_30 = arith.constant 0 : index
      %c0_31 = arith.constant 0 : index
      %47 = vector.load %arg12[%c0_29, %c0_30, %c0_31] : memref<4x8x8xf32, #tpu.memory_space<vmem>>, vector<1x8x8xf32>
      %48 = vector.shape_cast %47 : vector<1x8x8xf32> to vector<8x8xf32>
      %49 = vector.broadcast %32 : vector<8x1xf32> to vector<8x8xf32>
      %50 = arith.mulf %49, %48 : vector<8x8xf32>
      %51 = arith.addf %50, %46 : vector<8x8xf32>
      %c0_32 = arith.constant 0 : index
      %c0_33 = arith.constant 0 : index
      %c0_34 = arith.constant 0 : index
      %52 = vector.load %arg12[%c0_32, %c0_33, %c0_34] : memref<4x8x8xf32, #tpu.memory_space<vmem>>, vector<1x8x8xf32>
      %53 = vector.shape_cast %52 : vector<1x8x8xf32> to vector<8x8xf32>
      %54 = vector.shape_cast %51 : vector<8x8xf32> to vector<1x8x8xf32>
      tpu.vector_store %arg12[%c0_32, %c0_33, %c0_34], %54 {strides = array<i32>} : memref<4x8x8xf32, #tpu.memory_space<vmem>>, vector<1x8x8xf32>,
      %c0_35 = arith.constant 0 : index
      %c0_36 = arith.constant 0 : index
      %c0_37 = arith.constant 0 : index
      %55 = vector.load %arg10[%c0_35, %c0_36, %c0_37] : memref<4x8x1xf32, #tpu.memory_space<vmem>>, vector<1x8x1xf32>
      %56 = vector.shape_cast %55 : vector<1x8x1xf32> to vector<8x1xf32>
      %57 = vector.shape_cast %30 : vector<8x1xf32> to vector<1x8x1xf32>
      tpu.vector_store %arg10[%c0_35, %c0_36, %c0_37], %57 {strides = array<i32>} : memref<4x8x1xf32, #tpu.memory_space<vmem>>, vector<1x8x1xf32>,
      %c1 = arith.constant 1 : index
      %c0_38 = arith.constant 0 : index
      %c0_39 = arith.constant 0 : index
      %58 = vector.load %arg9[%c1, %c0_38, %c0_39] : memref<4x8x8xbf16, #tpu.memory_space<vmem>>, vector<1x8x8xbf16>
      %59 = vector.shape_cast %58 : vector<1x8x8xbf16> to vector<8x8xbf16>
      %c0_40 = arith.constant 0 : index
      %c0_41 = arith.constant 0 : index
      %c8 = arith.constant 8 : index
      %60 = vector.load %arg5[%c0_40, %c0_41, %c8] : memref<1x8x32xbf16, #tpu.memory_space<vmem>>, vector<1x8x8xbf16>
      %61 = vector.shape_cast %60 : vector<1x8x8xbf16> to vector<8x8xbf16>
      %c0_42 = arith.constant 0 : index
      %c0_43 = arith.constant 0 : index
      %c8_44 = arith.constant 8 : index
      %62 = vector.load %arg6[%c0_42, %c0_43, %c8_44] : memref<1x8x32xbf16, #tpu.memory_space<vmem>>, vector<1x8x8xbf16>
      %63 = vector.shape_cast %62 : vector<1x8x8xbf16> to vector<8x8xbf16>
      %cst_45 = arith.constant dense<0.000000e+00> : vector<8x8xf32>
      %64 = tpu.matmul %59, %61, %cst_45 {dimension_numbers = #tpu.dot_dimension_numbers<[1], [1], [0], [0], [0, 0, 1, 0], [], []>} : vector<8x8xbf16>, vector<8x8xbf16>, vector<8x8xf32> -> vector<8x8xf32>
      %65 = arith.addf %64, %17 : vector<8x8xf32>
      %c1_46 = arith.constant 1 : index
      %c0_47 = arith.constant 0 : index
      %c0_48 = arith.constant 0 : index
      %66 = vector.load %arg10[%c1_46, %c0_47, %c0_48] : memref<4x8x1xf32, #tpu.memory_space<vmem>>, vector<1x8x1xf32>
      %67 = vector.shape_cast %66 : vector<1x8x1xf32> to vector<8x1xf32>
      %cst_49 = arith.constant dense<0xFF800000> : vector<8xf32>
      %68 = vector.multi_reduction <maximumf>, %65, %cst_49 [1] : vector<8x8xf32> to vector<8xf32>
      %69 = vector.shape_cast %68 : vector<8xf32> to vector<8x1xf32>
      %70 = arith.maximumf %67, %69 : vector<8x1xf32>
      %71 = arith.subf %67, %70 : vector<8x1xf32>
      %72 = math.exp %71 : vector<8x1xf32>
      %73 = vector.broadcast %70 : vector<8x1xf32> to vector<8x8xf32>
      %74 = arith.subf %65, %73 : vector<8x8xf32>
      %75 = math.exp %74 : vector<8x8xf32>
      %c1_50 = arith.constant 1 : index
      %c0_51 = arith.constant 0 : index
      %c0_52 = arith.constant 0 : index
      %76 = vector.load %arg11[%c1_50, %c0_51, %c0_52] : memref<4x8x1xf32, #tpu.memory_space<vmem>>, vector<1x8x1xf32>
      %77 = vector.shape_cast %76 : vector<1x8x1xf32> to vector<8x1xf32>
      %78 = arith.mulf %72, %77 : vector<8x1xf32>
      %cst_53 = arith.constant dense<0.000000e+00> : vector<8xf32>
      %79 = vector.multi_reduction <add>, %75, %cst_53 [1] : vector<8x8xf32> to vector<8xf32>
      %80 = vector.shape_cast %79 : vector<8xf32> to vector<8x1xf32>
      %81 = arith.addf %78, %80 : vector<8x1xf32>
      %c1_54 = arith.constant 1 : index
      %c0_55 = arith.constant 0 : index
      %c0_56 = arith.constant 0 : index
      %82 = vector.load %arg11[%c1_54, %c0_55, %c0_56] : memref<4x8x1xf32, #tpu.memory_space<vmem>>, vector<1x8x1xf32>
      %83 = vector.shape_cast %82 : vector<1x8x1xf32> to vector<8x1xf32>
      %84 = vector.shape_cast %81 : vector<8x1xf32> to vector<1x8x1xf32>
      tpu.vector_store %arg11[%c1_54, %c0_55, %c0_56], %84 {strides = array<i32>} : memref<4x8x1xf32, #tpu.memory_space<vmem>>, vector<1x8x1xf32>,
      %85 = arith.truncf %75 : vector<8x8xf32> to vector<8x8xbf16>
      %cst_57 = arith.constant dense<0.000000e+00> : vector<8x8xf32>
      %86 = tpu.matmul %85, %63, %cst_57 {dimension_numbers = #tpu.dot_dimension_numbers<[1], [0], [0], [1], [0, 0, 1, 1], [], []>} : vector<8x8xbf16>, vector<8x8xbf16>, vector<8x8xf32> -> vector<8x8xf32>
      %c1_58 = arith.constant 1 : index
      %c0_59 = arith.constant 0 : index
      %c0_60 = arith.constant 0 : index
      %87 = vector.load %arg12[%c1_58, %c0_59, %c0_60] : memref<4x8x8xf32, #tpu.memory_space<vmem>>, vector<1x8x8xf32>
      %88 = vector.shape_cast %87 : vector<1x8x8xf32> to vector<8x8xf32>
      %89 = vector.broadcast %72 : vector<8x1xf32> to vector<8x8xf32>
      %90 = arith.mulf %89, %88 : vector<8x8xf32>
      %91 = arith.addf %90, %86 : vector<8x8xf32>
      %c1_61 = arith.constant 1 : index
      %c0_62 = arith.constant 0 : index
      %c0_63 = arith.constant 0 : index
      %92 = vector.load %arg12[%c1_61, %c0_62, %c0_63] : memref<4x8x8xf32, #tpu.memory_space<vmem>>, vector<1x8x8xf32>
      %93 = vector.shape_cast %92 : vector<1x8x8xf32> to vector<8x8xf32>
      %94 = vector.shape_cast %91 : vector<8x8xf32> to vector<1x8x8xf32>
      tpu.vector_store %arg12[%c1_61, %c0_62, %c0_63], %94 {strides = array<i32>} : memref<4x8x8xf32, #tpu.memory_space<vmem>>, vector<1x8x8xf32>,
      %c1_64 = arith.constant 1 : index
      %c0_65 = arith.constant 0 : index
      %c0_66 = arith.constant 0 : index
      %95 = vector.load %arg10[%c1_64, %c0_65, %c0_66] : memref<4x8x1xf32, #tpu.memory_space<vmem>>, vector<1x8x1xf32>
      %96 = vector.shape_cast %95 : vector<1x8x1xf32> to vector<8x1xf32>
      %97 = vector.shape_cast %70 : vector<8x1xf32> to vector<1x8x1xf32>
      tpu.vector_store %arg10[%c1_64, %c0_65, %c0_66], %97 {strides = array<i32>} : memref<4x8x1xf32, #tpu.memory_space<vmem>>, vector<1x8x1xf32>,
      %c2 = arith.constant 2 : index
      %c0_67 = arith.constant 0 : index
      %c0_68 = arith.constant 0 : index
      %98 = vector.load %arg9[%c2, %c0_67, %c0_68] : memref<4x8x8xbf16, #tpu.memory_space<vmem>>, vector<1x8x8xbf16>
      %99 = vector.shape_cast %98 : vector<1x8x8xbf16> to vector<8x8xbf16>
      %c0_69 = arith.constant 0 : index
      %c0_70 = arith.constant 0 : index
      %c16 = arith.constant 16 : index
      %100 = vector.load %arg5[%c0_69, %c0_70, %c16] : memref<1x8x32xbf16, #tpu.memory_space<vmem>>, vector<1x8x8xbf16>
      %101 = vector.shape_cast %100 : vector<1x8x8xbf16> to vector<8x8xbf16>
      %c0_71 = arith.constant 0 : index
      %c0_72 = arith.constant 0 : index
      %c16_73 = arith.constant 16 : index
      %102 = vector.load %arg6[%c0_71, %c0_72, %c16_73] : memref<1x8x32xbf16, #tpu.memory_space<vmem>>, vector<1x8x8xbf16>
      %103 = vector.shape_cast %102 : vector<1x8x8xbf16> to vector<8x8xbf16>
      %cst_74 = arith.constant dense<0.000000e+00> : vector<8x8xf32>
      %104 = tpu.matmul %99, %101, %cst_74 {dimension_numbers = #tpu.dot_dimension_numbers<[1], [1], [0], [0], [0, 0, 1, 0], [], []>} : vector<8x8xbf16>, vector<8x8xbf16>, vector<8x8xf32> -> vector<8x8xf32>
      %105 = arith.addf %104, %17 : vector<8x8xf32>
      %c2_75 = arith.constant 2 : index
      %c0_76 = arith.constant 0 : index
      %c0_77 = arith.constant 0 : index
      %106 = vector.load %arg10[%c2_75, %c0_76, %c0_77] : memref<4x8x1xf32, #tpu.memory_space<vmem>>, vector<1x8x1xf32>
      %107 = vector.shape_cast %106 : vector<1x8x1xf32> to vector<8x1xf32>
      %cst_78 = arith.constant dense<0xFF800000> : vector<8xf32>
      %108 = vector.multi_reduction <maximumf>, %105, %cst_78 [1] : vector<8x8xf32> to vector<8xf32>
      %109 = vector.shape_cast %108 : vector<8xf32> to vector<8x1xf32>
      %110 = arith.maximumf %107, %109 : vector<8x1xf32>
      %111 = arith.subf %107, %110 : vector<8x1xf32>
      %112 = math.exp %111 : vector<8x1xf32>
      %113 = vector.broadcast %110 : vector<8x1xf32> to vector<8x8xf32>
      %114 = arith.subf %105, %113 : vector<8x8xf32>
      %115 = math.exp %114 : vector<8x8xf32>
      %c2_79 = arith.constant 2 : index
      %c0_80 = arith.constant 0 : index
      %c0_81 = arith.constant 0 : index
      %116 = vector.load %arg11[%c2_79, %c0_80, %c0_81] : memref<4x8x1xf32, #tpu.memory_space<vmem>>, vector<1x8x1xf32>
      %117 = vector.shape_cast %116 : vector<1x8x1xf32> to vector<8x1xf32>
      %118 = arith.mulf %112, %117 : vector<8x1xf32>
      %cst_82 = arith.constant dense<0.000000e+00> : vector<8xf32>
      %119 = vector.multi_reduction <add>, %115, %cst_82 [1] : vector<8x8xf32> to vector<8xf32>
      %120 = vector.shape_cast %119 : vector<8xf32> to vector<8x1xf32>
      %121 = arith.addf %118, %120 : vector<8x1xf32>
      %c2_83 = arith.constant 2 : index
      %c0_84 = arith.constant 0 : index
      %c0_85 = arith.constant 0 : index
      %122 = vector.load %arg11[%c2_83, %c0_84, %c0_85] : memref<4x8x1xf32, #tpu.memory_space<vmem>>, vector<1x8x1xf32>
      %123 = vector.shape_cast %122 : vector<1x8x1xf32> to vector<8x1xf32>
      %124 = vector.shape_cast %121 : vector<8x1xf32> to vector<1x8x1xf32>
      tpu.vector_store %arg11[%c2_83, %c0_84, %c0_85], %124 {strides = array<i32>} : memref<4x8x1xf32, #tpu.memory_space<vmem>>, vector<1x8x1xf32>,
      %125 = arith.truncf %115 : vector<8x8xf32> to vector<8x8xbf16>
      %cst_86 = arith.constant dense<0.000000e+00> : vector<8x8xf32>
      %126 = tpu.matmul %125, %103, %cst_86 {dimension_numbers = #tpu.dot_dimension_numbers<[1], [0], [0], [1], [0, 0, 1, 1], [], []>} : vector<8x8xbf16>, vector<8x8xbf16>, vector<8x8xf32> -> vector<8x8xf32>
      %c2_87 = arith.constant 2 : index
      %c0_88 = arith.constant 0 : index
      %c0_89 = arith.constant 0 : index
      %127 = vector.load %arg12[%c2_87, %c0_88, %c0_89] : memref<4x8x8xf32, #tpu.memory_space<vmem>>, vector<1x8x8xf32>
      %128 = vector.shape_cast %127 : vector<1x8x8xf32> to vector<8x8xf32>
      %129 = vector.broadcast %112 : vector<8x1xf32> to vector<8x8xf32>
      %130 = arith.mulf %129, %128 : vector<8x8xf32>
      %131 = arith.addf %130, %126 : vector<8x8xf32>
      %c2_90 = arith.constant 2 : index
      %c0_91 = arith.constant 0 : index
      %c0_92 = arith.constant 0 : index
      %132 = vector.load %arg12[%c2_90, %c0_91, %c0_92] : memref<4x8x8xf32, #tpu.memory_space<vmem>>, vector<1x8x8xf32>
      %133 = vector.shape_cast %132 : vector<1x8x8xf32> to vector<8x8xf32>
      %134 = vector.shape_cast %131 : vector<8x8xf32> to vector<1x8x8xf32>
      tpu.vector_store %arg12[%c2_90, %c0_91, %c0_92], %134 {strides = array<i32>} : memref<4x8x8xf32, #tpu.memory_space<vmem>>, vector<1x8x8xf32>,
      %c2_93 = arith.constant 2 : index
      %c0_94 = arith.constant 0 : index
      %c0_95 = arith.constant 0 : index
      %135 = vector.load %arg10[%c2_93, %c0_94, %c0_95] : memref<4x8x1xf32, #tpu.memory_space<vmem>>, vector<1x8x1xf32>
      %136 = vector.shape_cast %135 : vector<1x8x1xf32> to vector<8x1xf32>
      %137 = vector.shape_cast %110 : vector<8x1xf32> to vector<1x8x1xf32>
      tpu.vector_store %arg10[%c2_93, %c0_94, %c0_95], %137 {strides = array<i32>} : memref<4x8x1xf32, #tpu.memory_space<vmem>>, vector<1x8x1xf32>,
      %c3 = arith.constant 3 : index
      %c0_96 = arith.constant 0 : index
      %c0_97 = arith.constant 0 : index
      %138 = vector.load %arg9[%c3, %c0_96, %c0_97] : memref<4x8x8xbf16, #tpu.memory_space<vmem>>, vector<1x8x8xbf16>
      %139 = vector.shape_cast %138 : vector<1x8x8xbf16> to vector<8x8xbf16>
      %c0_98 = arith.constant 0 : index
      %c0_99 = arith.constant 0 : index
      %c24 = arith.constant 24 : index
      %140 = vector.load %arg5[%c0_98, %c0_99, %c24] : memref<1x8x32xbf16, #tpu.memory_space<vmem>>, vector<1x8x8xbf16>
      %141 = vector.shape_cast %140 : vector<1x8x8xbf16> to vector<8x8xbf16>
      %c0_100 = arith.constant 0 : index
      %c0_101 = arith.constant 0 : index
      %c24_102 = arith.constant 24 : index
      %142 = vector.load %arg6[%c0_100, %c0_101, %c24_102] : memref<1x8x32xbf16, #tpu.memory_space<vmem>>, vector<1x8x8xbf16>
      %143 = vector.shape_cast %142 : vector<1x8x8xbf16> to vector<8x8xbf16>
      %cst_103 = arith.constant dense<0.000000e+00> : vector<8x8xf32>
      %144 = tpu.matmul %139, %141, %cst_103 {dimension_numbers = #tpu.dot_dimension_numbers<[1], [1], [0], [0], [0, 0, 1, 0], [], []>} : vector<8x8xbf16>, vector<8x8xbf16>, vector<8x8xf32> -> vector<8x8xf32>
      %145 = arith.addf %144, %17 : vector<8x8xf32>
      %c3_104 = arith.constant 3 : index
      %c0_105 = arith.constant 0 : index
      %c0_106 = arith.constant 0 : index
      %146 = vector.load %arg10[%c3_104, %c0_105, %c0_106] : memref<4x8x1xf32, #tpu.memory_space<vmem>>, vector<1x8x1xf32>
      %147 = vector.shape_cast %146 : vector<1x8x1xf32> to vector<8x1xf32>
      %cst_107 = arith.constant dense<0xFF800000> : vector<8xf32>
      %148 = vector.multi_reduction <maximumf>, %145, %cst_107 [1] : vector<8x8xf32> to vector<8xf32>
      %149 = vector.shape_cast %148 : vector<8xf32> to vector<8x1xf32>
      %150 = arith.maximumf %147, %149 : vector<8x1xf32>
      %151 = arith.subf %147, %150 : vector<8x1xf32>
      %152 = math.exp %151 : vector<8x1xf32>
      %153 = vector.broadcast %150 : vector<8x1xf32> to vector<8x8xf32>
      %154 = arith.subf %145, %153 : vector<8x8xf32>
      %155 = math.exp %154 : vector<8x8xf32>
      %c3_108 = arith.constant 3 : index
      %c0_109 = arith.constant 0 : index
      %c0_110 = arith.constant 0 : index
      %156 = vector.load %arg11[%c3_108, %c0_109, %c0_110] : memref<4x8x1xf32, #tpu.memory_space<vmem>>, vector<1x8x1xf32>
      %157 = vector.shape_cast %156 : vector<1x8x1xf32> to vector<8x1xf32>
      %158 = arith.mulf %152, %157 : vector<8x1xf32>
      %cst_111 = arith.constant dense<0.000000e+00> : vector<8xf32>
      %159 = vector.multi_reduction <add>, %155, %cst_111 [1] : vector<8x8xf32> to vector<8xf32>
      %160 = vector.shape_cast %159 : vector<8xf32> to vector<8x1xf32>
      %161 = arith.addf %158, %160 : vector<8x1xf32>
      %c3_112 = arith.constant 3 : index
      %c0_113 = arith.constant 0 : index
      %c0_114 = arith.constant 0 : index
      %162 = vector.load %arg11[%c3_112, %c0_113, %c0_114] : memref<4x8x1xf32, #tpu.memory_space<vmem>>, vector<1x8x1xf32>
      %163 = vector.shape_cast %162 : vector<1x8x1xf32> to vector<8x1xf32>
      %164 = vector.shape_cast %161 : vector<8x1xf32> to vector<1x8x1xf32>
      tpu.vector_store %arg11[%c3_112, %c0_113, %c0_114], %164 {strides = array<i32>} : memref<4x8x1xf32, #tpu.memory_space<vmem>>, vector<1x8x1xf32>,
      %165 = arith.truncf %155 : vector<8x8xf32> to vector<8x8xbf16>
      %cst_115 = arith.constant dense<0.000000e+00> : vector<8x8xf32>
      %166 = tpu.matmul %165, %143, %cst_115 {dimension_numbers = #tpu.dot_dimension_numbers<[1], [0], [0], [1], [0, 0, 1, 1], [], []>} : vector<8x8xbf16>, vector<8x8xbf16>, vector<8x8xf32> -> vector<8x8xf32>
      %c3_116 = arith.constant 3 : index
      %c0_117 = arith.constant 0 : index
      %c0_118 = arith.constant 0 : index
      %167 = vector.load %arg12[%c3_116, %c0_117, %c0_118] : memref<4x8x8xf32, #tpu.memory_space<vmem>>, vector<1x8x8xf32>
      %168 = vector.shape_cast %167 : vector<1x8x8xf32> to vector<8x8xf32>
      %169 = vector.broadcast %152 : vector<8x1xf32> to vector<8x8xf32>
      %170 = arith.mulf %169, %168 : vector<8x8xf32>
      %171 = arith.addf %170, %166 : vector<8x8xf32>
      %c3_119 = arith.constant 3 : index
      %c0_120 = arith.constant 0 : index
      %c0_121 = arith.constant 0 : index
      %172 = vector.load %arg12[%c3_119, %c0_120, %c0_121] : memref<4x8x8xf32, #tpu.memory_space<vmem>>, vector<1x8x8xf32>
      %173 = vector.shape_cast %172 : vector<1x8x8xf32> to vector<8x8xf32>
      %174 = vector.shape_cast %171 : vector<8x8xf32> to vector<1x8x8xf32>
      tpu.vector_store %arg12[%c3_119, %c0_120, %c0_121], %174 {strides = array<i32>} : memref<4x8x8xf32, #tpu.memory_space<vmem>>, vector<1x8x8xf32>,
      %c3_122 = arith.constant 3 : index
      %c0_123 = arith.constant 0 : index
      %c0_124 = arith.constant 0 : index
      %175 = vector.load %arg10[%c3_122, %c0_123, %c0_124] : memref<4x8x1xf32, #tpu.memory_space<vmem>>, vector<1x8x1xf32>
      %176 = vector.shape_cast %175 : vector<1x8x1xf32> to vector<8x1xf32>
      %177 = vector.shape_cast %150 : vector<8x1xf32> to vector<1x8x1xf32>
      tpu.vector_store %arg10[%c3_122, %c0_123, %c0_124], %177 {strides = array<i32>} : memref<4x8x1xf32, #tpu.memory_space<vmem>>, vector<1x8x1xf32>,
    } else {
    }
    %c0_i32_4 = arith.constant 0 : i32
    %12 = arith.cmpi eq, %arg2, %c0_i32_4 : i32
    %13 = arith.extui %12 : i1 to i32
    %c0_i32_5 = arith.constant 0 : i32
    %14 = arith.cmpi ne, %13, %c0_i32_5 : i32
    scf.if %14 {
      %c0 = arith.constant 0 : index
      %c0_6 = arith.constant 0 : index
      %c0_7 = arith.constant 0 : index
      %15 = vector.load %arg11[%c0, %c0_6, %c0_7] : memref<4x8x1xf32, #tpu.memory_space<vmem>>, vector<1x8x1xf32>
      %16 = vector.shape_cast %15 : vector<1x8x1xf32> to vector<8x1xf32>
      %17 = tpu.reciprocal %16 {approx = true} : vector<8x1xf32> -> vector<8x1xf32>
      %c0_8 = arith.constant 0 : index
      %c0_9 = arith.constant 0 : index
      %c0_10 = arith.constant 0 : index
      %18 = vector.load %arg12[%c0_8, %c0_9, %c0_10] : memref<4x8x8xf32, #tpu.memory_space<vmem>>, vector<1x8x8xf32>
      %19 = vector.shape_cast %18 : vector<1x8x8xf32> to vector<8x8xf32>
      %20 = vector.broadcast %17 : vector<8x1xf32> to vector<8x8xf32>
      %21 = arith.mulf %19, %20 : vector<8x8xf32>
      %22 = arith.truncf %21 : vector<8x8xf32> to vector<8x8xbf16>
      %c0_11 = arith.constant 0 : index
      %c0_12 = arith.constant 0 : index
      %c0_13 = arith.constant 0 : index
      %23 = vector.load %arg8[%c0_11, %c0_12, %c0_13] : memref<1x8x32xbf16, #tpu.memory_space<vmem>>, vector<1x8x8xbf16>
      %24 = vector.shape_cast %23 : vector<1x8x8xbf16> to vector<8x8xbf16>
      %25 = vector.shape_cast %22 : vector<8x8xbf16> to vector<1x8x8xbf16>
      tpu.vector_store %arg8[%c0_11, %c0_12, %c0_13], %25 {strides = array<i32>} : memref<1x8x32xbf16, #tpu.memory_space<vmem>>, vector<1x8x8xbf16>,
      %c1 = arith.constant 1 : index
      %c0_14 = arith.constant 0 : index
      %c0_15 = arith.constant 0 : index
      %26 = vector.load %arg11[%c1, %c0_14, %c0_15] : memref<4x8x1xf32, #tpu.memory_space<vmem>>, vector<1x8x1xf32>
      %27 = vector.shape_cast %26 : vector<1x8x1xf32> to vector<8x1xf32>
      %28 = tpu.reciprocal %27 {approx = true} : vector<8x1xf32> -> vector<8x1xf32>
      %c1_16 = arith.constant 1 : index
      %c0_17 = arith.constant 0 : index
      %c0_18 = arith.constant 0 : index
      %29 = vector.load %arg12[%c1_16, %c0_17, %c0_18] : memref<4x8x8xf32, #tpu.memory_space<vmem>>, vector<1x8x8xf32>
      %30 = vector.shape_cast %29 : vector<1x8x8xf32> to vector<8x8xf32>
      %31 = vector.broadcast %28 : vector<8x1xf32> to vector<8x8xf32>
      %32 = arith.mulf %30, %31 : vector<8x8xf32>
      %33 = arith.truncf %32 : vector<8x8xf32> to vector<8x8xbf16>
      %c0_19 = arith.constant 0 : index
      %c0_20 = arith.constant 0 : index
      %c8 = arith.constant 8 : index
      %34 = vector.load %arg8[%c0_19, %c0_20, %c8] : memref<1x8x32xbf16, #tpu.memory_space<vmem>>, vector<1x8x8xbf16>
      %35 = vector.shape_cast %34 : vector<1x8x8xbf16> to vector<8x8xbf16>
      %36 = vector.shape_cast %33 : vector<8x8xbf16> to vector<1x8x8xbf16>
      tpu.vector_store %arg8[%c0_19, %c0_20, %c8], %36 {strides = array<i32>} : memref<1x8x32xbf16, #tpu.memory_space<vmem>>, vector<1x8x8xbf16>,
      %c2 = arith.constant 2 : index
      %c0_21 = arith.constant 0 : index
      %c0_22 = arith.constant 0 : index
      %37 = vector.load %arg11[%c2, %c0_21, %c0_22] : memref<4x8x1xf32, #tpu.memory_space<vmem>>, vector<1x8x1xf32>
      %38 = vector.shape_cast %37 : vector<1x8x1xf32> to vector<8x1xf32>
      %39 = tpu.reciprocal %38 {approx = true} : vector<8x1xf32> -> vector<8x1xf32>
      %c2_23 = arith.constant 2 : index
      %c0_24 = arith.constant 0 : index
      %c0_25 = arith.constant 0 : index
      %40 = vector.load %arg12[%c2_23, %c0_24, %c0_25] : memref<4x8x8xf32, #tpu.memory_space<vmem>>, vector<1x8x8xf32>
      %41 = vector.shape_cast %40 : vector<1x8x8xf32> to vector<8x8xf32>
      %42 = vector.broadcast %39 : vector<8x1xf32> to vector<8x8xf32>
      %43 = arith.mulf %41, %42 : vector<8x8xf32>
      %44 = arith.truncf %43 : vector<8x8xf32> to vector<8x8xbf16>
      %c0_26 = arith.constant 0 : index
      %c0_27 = arith.constant 0 : index
      %c16 = arith.constant 16 : index
      %45 = vector.load %arg8[%c0_26, %c0_27, %c16] : memref<1x8x32xbf16, #tpu.memory_space<vmem>>, vector<1x8x8xbf16>
      %46 = vector.shape_cast %45 : vector<1x8x8xbf16> to vector<8x8xbf16>
      %47 = vector.shape_cast %44 : vector<8x8xbf16> to vector<1x8x8xbf16>
      tpu.vector_store %arg8[%c0_26, %c0_27, %c16], %47 {strides = array<i32>} : memref<1x8x32xbf16, #tpu.memory_space<vmem>>, vector<1x8x8xbf16>,
      %c3 = arith.constant 3 : index
      %c0_28 = arith.constant 0 : index
      %c0_29 = arith.constant 0 : index
      %48 = vector.load %arg11[%c3, %c0_28, %c0_29] : memref<4x8x1xf32, #tpu.memory_space<vmem>>, vector<1x8x1xf32>
      %49 = vector.shape_cast %48 : vector<1x8x1xf32> to vector<8x1xf32>
      %50 = tpu.reciprocal %49 {approx = true} : vector<8x1xf32> -> vector<8x1xf32>
      %c3_30 = arith.constant 3 : index
      %c0_31 = arith.constant 0 : index
      %c0_32 = arith.constant 0 : index
      %51 = vector.load %arg12[%c3_30, %c0_31, %c0_32] : memref<4x8x8xf32, #tpu.memory_space<vmem>>, vector<1x8x8xf32>
      %52 = vector.shape_cast %51 : vector<1x8x8xf32> to vector<8x8xf32>
      %53 = vector.broadcast %50 : vector<8x1xf32> to vector<8x8xf32>
      %54 = arith.mulf %52, %53 : vector<8x8xf32>
      %55 = arith.truncf %54 : vector<8x8xf32> to vector<8x8xbf16>
      %c0_33 = arith.constant 0 : index
      %c0_34 = arith.constant 0 : index
      %c24 = arith.constant 24 : index
      %56 = vector.load %arg8[%c0_33, %c0_34, %c24] : memref<1x8x32xbf16, #tpu.memory_space<vmem>>, vector<1x8x8xbf16>
      %57 = vector.shape_cast %56 : vector<1x8x8xbf16> to vector<8x8xbf16>
      %58 = vector.shape_cast %55 : vector<8x8xbf16> to vector<1x8x8xbf16>
      tpu.vector_store %arg8[%c0_33, %c0_34, %c24], %58 {strides = array<i32>} : memref<1x8x32xbf16, #tpu.memory_space<vmem>>, vector<1x8x8xbf16>,
    } else {
    }
    return
  }
  func.func @transform_0(%arg0: i32, %arg1: i32, %arg2: i32, %arg3: memref<2xi32, #tpu.memory_space<smem>>) -> (i32, i32, i32) {
    %c0_i32 = arith.constant 0 : i32
    %c0_i32_0 = arith.constant 0 : i32
    return %arg0, %arg1, %c0_i32 : i32, i32, i32
  }
  func.func @transform_1(%arg0: i32, %arg1: i32, %arg2: i32, %arg3: memref<2xi32, #tpu.memory_space<smem>>) -> (i32, i32, i32) {
    %c0_i32 = arith.constant 0 : i32
    %c0_i32_0 = arith.constant 0 : i32
    return %arg0, %arg2, %c0_i32 : i32, i32, i32
  }
  func.func @transform_2(%arg0: i32, %arg1: i32, %arg2: i32, %arg3: memref<2xi32, #tpu.memory_space<smem>>) -> (i32, i32, i32) {
    %c0_i32 = arith.constant 0 : i32
    %c0_i32_0 = arith.constant 0 : i32
    return %arg0, %arg2, %c0_i32 : i32, i32, i32
  }
  func.func @transform_3(%arg0: i32, %arg1: i32, %arg2: i32, %arg3: memref<2xi32, #tpu.memory_space<smem>>) -> (i32, i32, i32) {
    %c0_i32 = arith.constant 0 : i32
    return %arg0, %arg1, %arg2 : i32, i32, i32
  }
  func.func @transform_4(%arg0: i32, %arg1: i32, %arg2: i32, %arg3: memref<2xi32, #tpu.memory_space<smem>>) -> (i32, i32, i32) {
    %c0_i32 = arith.constant 0 : i32
    %c0_i32_0 = arith.constant 0 : i32
    return %arg0, %arg1, %c0_i32 : i32, i32, i32
  }
}

</mosaic_0001>

<bundles_post_ra>
// kernel: multi_head_attention.9
= control target key start
LH: loop header
LB: loop body
LE: loop exit
PB: predicated region body
PF: predicated region fallthrough
CT: control target
= control target key end

     0   :  { %v177_v1 = vmov 0.0   ;;  %vm178_vm0 = vmmov 0   ;;  %vm20_vm1 = vcmask 261120   ;;  %s233_s0 = inlined_call_operand.vmem [shape: bf16[16,32], index: 0, kind: input, shape index: {}]   ;;  %s234_s1 = inlined_call_operand.vmem [shape: bf16[32,32], index: 1, kind: input, shape index: {}]   ;;  %s235_s2 = inlined_call_operand.vmem [shape: f32[1,32], index: 2, kind: input, shape index: {}]   ;;  %s236_s3 = inlined_call_operand.hbm [shape: f32[16,32], index: 3, kind: output, shape index: {}]  }
   0x1   :  { %v150_v0 = vld [vmem:[%s234_s1] sm:$0xff]   ;;  %137 = vmatprep.subr.bf16.mxu0 %v177_v1  ;;  %v151_v2 = vld [vmem:[%s234_s1 + $0x8] sm:$0xff]   ;;  %141 = vmatprep.mubr.msk.bf16.mxu0 %vm178_vm0, %v177_v1  ;;  %21 = vst.msk [vmem:[#allocation2] sm:$0xff] %vm20_vm1, %v177_v1  ;;  %22 = vst.msk [vmem:[#allocation2 + $0x8] sm:$0xff] %vm20_vm1, %v177_v1 }
   0x2   :  { %138 = vmatpush3.bf16.msra.mxu0 %v150_v0 }
   0x3   :  { %139 = vmatprep.subr.bf16.mxu0 %v177_v1 }
   0x4   :  { %8 = vsyncpa [#allocation4], 0  ;;  %v152_v3 = vld [vmem:[%s233_s0] sm:$0xff]   ;;  %s179_s0 = smov [#allocation3]  }
   0x5   :  { %v133_v12 = vld [vmem:[%s235_s2] ss:$0 sm:$0xff]  ;;  %s118_s19 = sshll.u32 %s179_s0, 4  ;;  %s119_s19 = int_to_ptr.vmem [resolvable:$true] %s118_s19 }
   0x6   :  { %140 = vmatpush3.bf16.msra.mxu0 %v151_v2  ;;  %s153_s20 = scalar_lea.vmem %s119_s19, 256  ;;  %p158_p1 = scmp.lt.s32.totalorder %s119_s19, %s119_s19 }
   0x7   :  { %p154_p0 = scmp.ne.s32.totalorder %s119_s19, %s153_s20  ;;  %p159_p2 = scmp.lt.s32.totalorder %s153_s20, %s153_s20 }
   0x8   :  { %v23_v4 = vld [vmem:[#allocation2] sm:$0xff]  ;;  %v24_v6 = vld [vmem:[#allocation2 + $0x8] sm:$0xff] }
   0x9   :  { %142 = vmatmul.mubr.msk.bf16.vlgmr.msra.gmra.mrb[0].mxu0 %vm20_vm1, %v152_v3  ;;  %p160_p3 = por %p159_p2, %p158_p1 }
   0xb   :  { %p161_p4 = pnand %p160_p3, %p154_p0 }
  0xdc   :  { %v86_v5 = vpop.f32.mrb[0].mxu0 }
  0xdd   :  { %v93_v7 = vadd.f32 %v86_v5, %v23_v4  ;;  %v143_v8 = vpop.f32.mrb[1].mxu0 }
  0xde   :  { %v89_v9 = vpop.f32.mrb[2].mxu0 }
  0xdf   :  { %95 = vst.msk [vmem:[#allocation2] sm:$0xff] %vm20_vm1, %v93_v7  ;;  %v94_v10 = vadd.f32 %v89_v9, %v24_v6  ;;  %v144_v11 = vpop.f32.mrb[3].mxu0 }
  0xe1   :  { %96 = vst.msk [vmem:[#allocation2 + $0x8] sm:$0xff] %vm20_vm1, %v94_v10 }
  0xe6   :  { %v100_v13 = vld [vmem:[#allocation2] sm:$0xff] }
  0xe7   :  { %v109_v14 = vadd.f32 %v133_v12, %v100_v13 }
  0xe8   :  { %v101_v15 = vld [vmem:[#allocation2 + $0x8] sm:$0xff] }
  0xe9   :  { %v110_v16 = vadd.f32 %v133_v12, %v101_v15  ;;  %111 = vst.msk [vmem:[#allocation3] sm:$0xff] %vm20_vm1, %v109_v14 }
  0xeb   :  { %112 = vst.msk [vmem:[#allocation3 + $0x8] sm:$0xff] %vm20_vm1, %v110_v16 }
  0xec   :  { %164 = shalt.err (!%p161_p4)
}
  0xed   :  { %s165_s22 = scalar_lea.hbm %s236_s3, 256 }
  0xee   :  { %p166_p5 = scmp.ne.s32.totalorder %s236_s3, %s165_s22  ;;  %p169_p6 = scmp.lt.u32.totalorder %s165_s22, %s236_s3 }
  0xf0   :  { %p171_p7 = pnand %p169_p6, %p166_p5 }
  0xf2   :  { %174 = shalt.err (!%p171_p7)
}
  0xf3   :  { %s180_s27 = smov 128   ;;  %s181_s28 = smov 8  }
  0xf4   :  { %124 = dma.vmem_to_hbm [thread:$0]  %s119_s19, 256, %s236_s3, [#allocation4], %s180_s27, %s180_s27, %s181_s28  }
  0xf5   :  { %175 = dma.done.wait [#allocation4], 256  }
  0xf6   :  { %176 = vsyncadd [#allocation4], 4294967040 }
  0xf7   :  { %128 = vsyncpa [#allocation4], 1 }

// kernel: multi_head_attention.5
= control target key start
LH: loop header
LB: loop body
LE: loop exit
PB: predicated region body
PF: predicated region fallthrough
CT: control target
= control target key end

     0   :  { %vm19_vm0 = vcmask 261120   ;;  %v150_v0 = vmov 0.0   ;;  %vm151_vm1 = vmmov 0   ;;  %vm118_vm2 = vcmask 257024   ;;  %s195_s1 = inlined_call_operand.vmem [shape: bf16[32,32], index: 1, kind: input, shape index: {}]   ;;  %s196_s0 = inlined_call_operand.vmem [shape: bf16[16,32], index: 0, kind: input, shape index: {}]   ;;  %s197_s2 = inlined_call_operand.vmem [shape: f32[1,32], index: 2, kind: input, shape index: {}]   ;;  %s198_s3 = inlined_call_operand.vmem [shape: bf16[16,32], index: 3, kind: output, shape index: {}]  }
   0x1   :  { %137 = vmatprep.subr.bf16.mxu0 %v150_v0  ;;  %v147_v1 = vld [vmem:[%s195_s1] sm:$0xff]   ;;  %141 = vmatprep.mubr.msk.bf16.mxu0 %vm151_vm1, %v150_v0  ;;  %20 = vst.msk [vmem:[#allocation2] sm:$0xff] %vm19_vm0, %v150_v0  ;;  %21 = vst.msk [vmem:[#allocation2 + $0x8] sm:$0xff] %vm19_vm0, %v150_v0  ;;  %v148_v2 = vld [vmem:[%s195_s1 + $0x8] sm:$0xff]  }
   0x2   :  { %138 = vmatpush3.bf16.msra.mxu0 %v147_v1  ;;  %v149_v3 = vld [vmem:[%s196_s0] sm:$0xff]  }
   0x3   :  { %139 = vmatprep.subr.bf16.mxu0 %v150_v0  ;;  %v129_v12 = vld [vmem:[%s197_s2] ss:$0 sm:$0xff] }
   0x6   :  { %140 = vmatpush3.bf16.msra.mxu0 %v148_v2 }
   0x8   :  { %v22_v4 = vld [vmem:[#allocation2] sm:$0xff]  ;;  %v23_v6 = vld [vmem:[#allocation2 + $0x8] sm:$0xff] }
   0x9   :  { %142 = vmatmul.mubr.msk.bf16.vlgmr.msra.gmra.mrb[0].mxu0 %vm19_vm0, %v149_v3 }
  0xdc   :  { %v85_v5 = vpop.f32.mrb[0].mxu0 }
  0xdd   :  { %v92_v7 = vadd.f32 %v85_v5, %v22_v4  ;;  %v143_v8 = vpop.f32.mrb[1].mxu0 }
  0xde   :  { %v88_v9 = vpop.f32.mrb[2].mxu0 }
  0xdf   :  { %94 = vst.msk [vmem:[#allocation2] sm:$0xff] %vm19_vm0, %v92_v7  ;;  %v93_v10 = vadd.f32 %v88_v9, %v23_v6  ;;  %v144_v11 = vpop.f32.mrb[3].mxu0 }
  0xe1   :  { %95 = vst.msk [vmem:[#allocation2 + $0x8] sm:$0xff] %vm19_vm0, %v93_v10 }
  0xe6   :  { %v99_v13 = vld [vmem:[#allocation2] sm:$0xff] }
  0xe7   :  { %v108_v14 = vadd.f32 %v129_v12, %v99_v13 }
  0xe8   :  { %v100_v15 = vld [vmem:[#allocation2 + $0x8] sm:$0xff] }
  0xe9   :  { %v132_v16 = vpack.c.bf16 %v108_v14, %v108_v14  ;;  %v109_v17 = vadd.f32 %v129_v12, %v100_v15 }
  0xeb   :  { %119 = vst.msk [vmem:[%s198_s3] sm:$0xf] %vm118_vm2, %v132_v16  ;;  %v133_v18 = vpack.c.bf16 %v109_v17, %v109_v17 }
  0xed   :  { %120 = vst.msk [vmem:[%s198_s3 + $0x4] sm:$0xf] %vm118_vm2, %v133_v18 }

// kernel: multi_head_attention.8
= control target key start
LH: loop header
LB: loop body
LE: loop exit
PB: predicated region body
PF: predicated region fallthrough
CT: control target
= control target key end

     0   :  { %s1590_s0 = inlined_call_operand.vmem [shape: s32[2], index: 0, kind: input, shape index: {}]   ;;  %s1591_s1 = inlined_call_operand.vmem [shape: bf16[2,8,32], index: 1, kind: input, shape index: {}]   ;;  %s1592_s2 = inlined_call_operand.vmem [shape: bf16[2,8,32], index: 2, kind: input, shape index: {}]   ;;  %s1593_s3 = inlined_call_operand.vmem [shape: bf16[2,8,32], index: 3, kind: input, shape index: {}]   ;;  %s1594_s4 = inlined_call_operand.vmem [shape: bf16[2,8,8], index: 4, kind: input, shape index: {}]   ;;  %s1595_s5 = inlined_call_operand.vmem [shape: bf16[2,8,32], index: 5, kind: output, shape index: {}]  }
   0x1   :  { %s10_s20 = sshll.u32 %s1590_s0, 4  ;;  %s11_s20 = int_to_ptr.vmem [resolvable:$true] %s10_s20 }
   0x2   :  { %s1317_s21 = scalar_lea.vmem %s11_s20, 16  ;;  %p1322_p1 = scmp.lt.s32.totalorder %s11_s20, %s11_s20 }
   0x3   :  { %p1318_p0 = scmp.ne.s32.totalorder %s11_s20, %s1317_s21  ;;  %p1323_p2 = scmp.lt.s32.totalorder %s1317_s21, %s1317_s21 }
   0x5   :  { %p1324_p3 = por %p1323_p2, %p1322_p1 }
   0x7   :  { %p1325_p4 = pnand %p1324_p3, %p1318_p0 }
   0x9   :  { %1328 = shalt.err (!%p1325_p4)  }
   0xa   :  { %s1355_s22 = smov [#allocation7]  }
   0xb   :  { %13 = dma.vmem_to_smem %s11_s20, 16, %s1355_s22, [#allocation6] }
   0xc   :  { %1341 = dma.done.wait [#allocation6], 16 }
   0xd   :  { %1342 = vsyncadd [#allocation6], 4294967280 }
   0xe   :  { %15 = sfence }
   0xf   :  { %s1404_s23 = smov 0   ;;  %s1406_s24 = smov 0  }
  0x10   :  { %s1408_s25 = smov 0  }
  0x11 LB: > { %s40_s0 = sadd.s32 1, %s1349_s24  ;;  %p1150_p5 = scmp.ge.s32.totalorder %s1353_s25, 1  ;;  %s1353_s25 = sphi %s1408_s25, %s21_s25   ;;  %s1349_s24 = sphi %s1406_s24, %s1597_s24   ;;  %s1345_s23 = sphi %s1404_s23, %s1596_s23  }
  0x12   : > { %p42_p6 = scmp.ge.s32.totalorder %s40_s0, 2  ;;  %p241_p7 = scmp.lt.s32.totalorder %s1353_s25, 3 }
  0x14   : > { %s1599_s0 = smov (%p42_p6, %s40_s0), 0  ;;  %p242_p8 = pnand %p1150_p5, %p241_p7 }
  0x15   : > { %p295_p9 = scmp.lt.s32.totalorder (!%p242_p8), %s1345_s23, 1  ;;  %vm338_vm0 = vcmask (!%p242_p8), 7168   ;;  %v1356_v0 = vmov (!%p242_p8), -inf   ;;  %v1357_v1 = vmov (!%p242_p8), 0.0   ;;  %vm347_vm1 = vcmask (!%p242_p8), 64512   ;;  %s378_s27 = sld [smem:[#allocation7 + %s1345_s23]] (!%p242_p8) }
  0x16   : > { %245 = sbr.rel (%p242_p8) target bundleno = 1565 (0x61d), region = 36  ;;  %339 = vst.msk [vmem:[#allocation3] sm:$0xff] (!%p242_p8), %vm338_vm0, %v1356_v0  ;;  %340 = vst.msk [vmem:[#allocation3 + $0x8] sm:$0xff] (!%p242_p8), %vm338_vm0, %v1356_v0  ;;  %vm353_vm2 = vcmask (!%p242_p8), 60416   ;;  %s1358_s19 = smov (!%p242_p8), 120  }
  0x17   : > { %341 = vst.msk [vmem:[#allocation3 + $0x10] sm:$0xff] (!%p242_p8), %vm338_vm0, %v1356_v0  ;;  %342 = vst.msk [vmem:[#allocation3 + $0x18] sm:$0xff] (!%p242_p8), %vm338_vm0, %v1356_v0  ;;  %s1359_s20 = smov (!%p242_p8), 104   ;;  %s1360_s21 = smov (!%p242_p8), 112  }
  0x18   : > { %343 = vst.msk [vmem:[#allocation4] sm:$0xff] (!%p242_p8), %vm338_vm0, %v1357_v1  ;;  %344 = vst.msk [vmem:[#allocation4 + $0x8] sm:$0xff] (!%p242_p8), %vm338_vm0, %v1357_v1 }
  0x19   : > { %345 = vst.msk [vmem:[#allocation4 + $0x10] sm:$0xff] (!%p242_p8), %vm338_vm0, %v1357_v1  ;;  %346 = vst.msk [vmem:[#allocation4 + $0x18] sm:$0xff] (!%p242_p8), %vm338_vm0, %v1357_v1 }
  0x1a   : > { %348 = vst.msk [vmem:[#allocation5] sm:$0xff] (!%p242_p8), %vm347_vm1, %v1357_v1  ;;  %349 = vst.msk [vmem:[#allocation5 + $0x8] sm:$0xff] (!%p242_p8), %vm347_vm1, %v1357_v1 }
  0x1b   : > { %350 = vst.msk [vmem:[#allocation5 + $0x10] sm:$0xff] (!%p242_p8), %vm347_vm1, %v1357_v1  ;;  %351 = vst.msk [vmem:[#allocation5 + $0x18] sm:$0xff] (!%p242_p8), %vm347_vm1, %v1357_v1  ;;  %p1156_p10 = scmp.eq.s32.totalorder (!%p242_p8), %s378_s27, 0 }
  0x1d   : > { %s296_s26 = scalar_select %p295_p9, %s1345_s23, 1 }
  0x1e   : > { %v1361_v10 = vmov (!%p1156_p10), 0.0   ;;  %vm1362_vm3 = vmmov (!%p1156_p10), 0   ;;  %v1363_v21 = vmov (!%p1156_p10), 0   ;;  %s1365_s27 = smov (!%p1156_p10), 112   ;;  %v1493_v25 = vld [vmem:[#allocation3] sm:$0xff] (!%p1156_p10)  ;;  %vm463_vm4 = vcmask (!%p1156_p10), 1043456  }
  0x1f   : > { %s1434_s28 = sshll.u32 %s296_s26, 2  ;;  %1195 = vmatprep.subr.bf16.mxu0 (!%p1156_p10), %v1361_v10  ;;  %1197 = vmatprep.mubr.msk.bf16.mxu0 (!%p1156_p10), %vm1362_vm3, %v1361_v10  ;;  %s1364_s26 = smov (!%p1156_p10), 120  }
  0x20   : > { %s301_s6 = scalar_lea.vmem %s1591_s1, %s1434_s28  ;;  %s1444_s9 = scalar_lea.vmem %s1592_s2, %s1434_s28  ;;  %1201 = vmatprep.subr.bf16.mxu1 (!%p1156_p10), %v1361_v10  ;;  %1203 = vmatprep.mubr.msk.bf16.mxu1 (!%p1156_p10), %vm1362_vm3, %v1361_v10 }
  0x21   : > { %s1450_s12 = scalar_lea.vmem %s1593_s3, %s1434_s28  ;;  %s325_s15 = scalar_lea.vmem %s1594_s4, %s1434_s28  ;;  %v355_v2 = vld [vmem:[%s301_s6] sm:$0xf]  ;;  %1283 = vset.pattern.permute.xlu0 (!%p1156_p10), %v1363_v21  ;;  %1284 = vset.pattern.permute.xlu1 (!%p1156_p10), %v1363_v21 }
  0x22   : > { %v352_v3 = vld [vmem:[%s301_s6] sm:$0xf]  ;;  %s1460_s18 = scalar_lea.vmem %s1595_s5, %s1434_s28  ;;  %357 = vrot.lane.b32.xlu0 %v355_v2, %s1358_s19  ;;  %s1366_s28 = smov (!%p1156_p10), 104  }
  0x23   : > { %v369_v4 = vld [vmem:[%s301_s6] sm:$0xf]  ;;  %354 = vst.msk [vmem:[#allocation2] sm:$0xf] %vm353_vm2, %v352_v3 }
  0x24   : > { %371 = vrot.lane.b32.xlu1 %v369_v4, %s1359_s20  ;;  %v362_v5 = vld [vmem:[%s301_s6] sm:$0xf] }
  0x25   : > { %v386_v9 = vld [vmem:[%s1444_s9] sm:$0xf] (!%p1156_p10) }
  0x26   : > { %364 = vrot.lane.b32.xlu0 %v362_v5, %s1360_s21  ;;  %v393_v11 = vsel (!%p1156_p10), %vm347_vm1, %v386_v9, 0  ;;  %v383_v13 = vld [vmem:[%s325_s15] sm:$0xf] (!%p1156_p10) }
  0x27   : > { %1196 = vmatpush3.bf16.xpose.msra.mxu0 (!%p1156_p10), %v393_v11  ;;  %v1483_v14 = vunpack.c.l.bf16 (!%p1156_p10), %v383_v13  ;;  %v1285_v22 = vld [vmem:[%s1444_s9] ss:$0 sps:$4 sm:$0xff] (!%p1156_p10)  }
  0x28   : > { %1213 = vmatprep.subr.bf16.mxu0 (!%p1156_p10), %v1361_v10  ;;  %524 = vrot.lane.b32.xlu1 (!%p1156_p10), %v1285_v22, %s1364_s26  ;;  %v1286_v23 = vld [vmem:[%s1444_s9] ss:$0 sps:$4 sm:$0xff] (!%p1156_p10)  }
  0x29   : > { %v1287_v24 = vld [vmem:[%s1444_s9] ss:$0 sps:$4 sm:$0xff] (!%p1156_p10)  }
  0x2a   : > { %v385_v12 = vld [vmem:[#allocation2] sm:$0xf] (!%p1156_p10) }
  0x2b   : > { %v387_v29 = vld [vmem:[%s1450_s12] sm:$0xf] (!%p1156_p10) }
  0x2c   : > { %667 = vrot.lane.b32.xlu1 (!%p1156_p10), %v1286_v23, %s1365_s27  ;;  %v465_v30 = vsel (!%p1156_p10), %vm463_vm4, %v387_v29, 0  ;;  %v1288_v4 = vld [vmem:[%s1450_s12] ss:$0 sps:$4 sm:$0xff] (!%p1156_p10)  }
  0x2d   : > { %1202 = vmatpush3.bf16.msra.mxu1 (!%p1156_p10), %v465_v30  ;;  %v716_v9 = vld [vmem:[#allocation3 + $0x10] sm:$0xff] (!%p1156_p10) }
  0x2e   : > { %1198 = vmatmul.mubr.msk.bf16.vlgmr.msra.gmra.mrb[0].mxu0 (!%p1156_p10), %vm347_vm1, %v385_v12  ;;  %1207 = vmatprep.subr.bf16.mxu1 (!%p1156_p10), %v1361_v10  ;;  %v1290_v22 = vld [vmem:[%s1450_s12] ss:$0 sps:$4 sm:$0xff] (!%p1156_p10)  }
  0x2f   : > { %1215 = vmatprep.mubr.msk.bf16.mxu0 (!%p1156_p10), %vm1362_vm3, %v1361_v10 }
  0x30   : > { %810 = vrot.lane.b32.xlu1 (!%p1156_p10), %v1287_v24, %s1366_s28 }
  0x93   : > { %382 = sbr.rel (%p1156_p10) target bundleno = 1300 (0x514), region = 44 }
  0x94   : > { %v358_v6 = vpop.permute.xlu0 %357 }
  0x95   : > { %361 = vst.msk [vmem:[#allocation2 + $0x4] sm:$0xf] %vm353_vm2, %v358_v6  ;;  %v573_v6 = vld [vmem:[#allocation3 + $0x8] sm:$0xff] (!%p1156_p10) }
  0x96   : > { %v372_v7 = vpop.permute.xlu1 %371 }
  0x97   : > { %375 = vst.msk [vmem:[#allocation2 + $0xc] sm:$0xf] %vm353_vm2, %v372_v7 }
  0x98   : > { %v365_v8 = vpop.permute.xlu0 %364 }
  0x99   : > { %368 = vst.msk [vmem:[#allocation2 + $0x8] sm:$0xf] %vm353_vm2, %v365_v8 }
  0x9a   : > { %v525_v34 = vpop.permute.xlu1 %524 }
  0x9b   : > { %v530_v36 = vsel %vm347_vm1, %v525_v34, 0 }
  0x9c   : > { %v518_v39 = vld [vmem:[#allocation2 + $0x4] sm:$0xf] }
  0x9e   : > { %v668_v38 = vpop.permute.xlu1 %667  ;;  %v804_v44 = vld [vmem:[#allocation2 + $0xc] sm:$0xf] }
  0x9f   : > { %v673_v40 = vsel %vm347_vm1, %v668_v38, 0 }
  0xa0   : > { %v661_v42 = vld [vmem:[#allocation2 + $0x8] sm:$0xf] }
  0xa2   : > { %v811_v41 = vpop.permute.xlu1 %810 }
  0xa3   : > { %v816_v43 = vsel %vm347_vm1, %v811_v41, 0 }
 0x101   : > { %v429_v15 = vpop.f32.mrb[0].mxu0 }
 0x102   : > { %v430_v16 = vadd.f32 %v429_v15, %v1483_v14  ;;  %v1199_v17 = vpop.f32.mrb[1].mxu0 }
 0x103   : > { %v432_v18 = vpop.f32.mrb[2].mxu0  ;;  %v507_v17 = vld [vmem:[#allocation5] sm:$0xff] }
 0x104   : > { %v1200_v19 = vpop.f32.mrb[3].mxu0  ;;  %v436_v20 = vsel %vm347_vm1, %v430_v16, -inf  ;;  %v1289_v18 = vld [vmem:[%s1450_s12] ss:$0 sps:$4 sm:$0xff]  }
 0x105   : > { %437 = vmax.xlane.f32.xlu0 %v436_v20 }
 0x192   : > { %v438_v26 = vpop.xlane.xlu0 %437 }
 0x193   : > { %v439_v27 = vmax.f32 %v1493_v25, %v438_v26 }
 0x195   : > { %v440_v28 = vsub.f32 %v1493_v25, %v439_v27  ;;  %516 = vst.msk [vmem:[#allocation3] sm:$0xff] %vm338_vm0, %v439_v27  ;;  %445 = vperm.xlu0 %1283, %v439_v27  }
 0x197   : > { %v441_v3 = vmul.f32 1.442695, %v440_v28 }
 0x214   : > { %v446_v31 = vpop.permute.xlu0 %445 }
 0x215   : > { %v448_v32 = vsub.f32 %v430_v16, %v446_v31 }
 0x217   : > { %v449_v33 = vmul.f32 1.442695, %v448_v32 }
 0x219   : > { %1291 = vpow2.f32 %v449_v33 }
 0x21a   : > { %1293 = vpow2.f32 %v441_v3  ;;  %v876_v3 = vld [vmem:[#allocation4 + $0x18] sm:$0xff] }
 0x223   : > { %v1501_v35 = vpop.eup %1291 }
 0x224   : > { %v459_v37 = vpack.c.bf16 %v1501_v35, %v1501_v35  ;;  %v1537_v5 = vpop.eup %1293  ;;  %v453_v24 = vsel %vm347_vm1, %v1501_v35, 0.0 }
 0x226   : > { %1204 = vmatmul.mubr.msk.bf16.vlgmr.msra.gmra.mrb[0].mxu1 %vm347_vm1, %v459_v37 }
 0x227   : > { %1208 = vmatpush3.bf16.xpose.msra.mxu1 %v530_v36  ;;  %1209 = vmatprep.mubr.msk.bf16.mxu1 %vm1362_vm3, %v1361_v10 }
 0x228   : > { %1219 = vmatprep.subr.bf16.mxu1 %v1361_v10 }
 0x22e   : > { %1210 = vmatmul.mubr.msk.bf16.vlgmr.msra.gmra.mrb[4].mxu1 %vm347_vm1, %v518_v39 }
 0x22f   : > { %1220 = vmatpush3.bf16.xpose.msra.mxu1 %v673_v40  ;;  %1221 = vmatprep.mubr.msk.bf16.mxu1 %vm1362_vm3, %v1361_v10 }
 0x230   : > { %1231 = vmatprep.subr.bf16.mxu1 %v1361_v10 }
 0x236   : > { %1222 = vmatmul.mubr.msk.bf16.vlgmr.msra.gmra.mrb[8].mxu1 %vm347_vm1, %v661_v42 }
 0x237   : > { %1232 = vmatpush3.bf16.xpose.msra.mxu1 %v816_v43  ;;  %1233 = vmatprep.mubr.msk.bf16.mxu1 %vm1362_vm3, %v1361_v10 }
 0x23e   : > { %1234 = vmatmul.mubr.msk.bf16.vlgmr.msra.gmra.mrb[12].mxu1 %vm347_vm1, %v804_v44 }
 0x2f9   : > { %v501_v45 = vpop.f32.mrb[0].mxu1 }
 0x2fa   : > { %v1205_v46 = vpop.f32.mrb[1].mxu1 }
 0x2fb   : > { %v504_v47 = vpop.f32.mrb[2].mxu1 }
 0x2fc   : > { %v1206_v48 = vpop.f32.mrb[3].mxu1 }
 0x301   : > { %v566_v49 = vpop.f32.mrb[4].mxu1 }
 0x302   : > { %v1521_v50 = vadd.f32 %v566_v49, %v1483_v14  ;;  %v1211_v51 = vpop.f32.mrb[5].mxu1 }
 0x303   : > { %v569_v52 = vpop.f32.mrb[6].mxu1 }
 0x304   : > { %v1212_v53 = vpop.f32.mrb[7].mxu1  ;;  %v574_v54 = vsel %vm347_vm1, %v1521_v50, -inf }
 0x305   : > { %575 = vmax.xlane.f32.xlu1 %v574_v54 }
 0x309   : > { %v709_v55 = vpop.f32.mrb[8].mxu1 }
 0x30a   : > { %v1526_v56 = vadd.f32 %v709_v55, %v1483_v14  ;;  %v1223_v57 = vpop.f32.mrb[9].mxu1 }
 0x30b   : > { %v712_v58 = vpop.f32.mrb[10].mxu1 }
 0x30c   : > { %v1224_v59 = vpop.f32.mrb[11].mxu1  ;;  %v717_v60 = vsel %vm347_vm1, %v1526_v56, -inf }
 0x30d   : > { %718 = vmax.xlane.f32.xlu0 %v717_v60  ;;  %v590_v60 = vld [vmem:[#allocation4 + $0x8] sm:$0xff] }
 0x311   : > { %v852_v61 = vpop.f32.mrb[12].mxu1 }
 0x312   : > { %v1531_v62 = vadd.f32 %v852_v61, %v1483_v14  ;;  %v1235_v63 = vpop.f32.mrb[13].mxu1  ;;  %v859_v14 = vld [vmem:[#allocation3 + $0x18] sm:$0xff] }
 0x313   : > { %v855_v0 = vpop.f32.mrb[14].mxu1 }
 0x314   : > { %v1236_v1 = vpop.f32.mrb[15].mxu1  ;;  %v860_v2 = vsel %vm347_vm1, %v1531_v62, -inf  ;;  %v733_v0 = vld [vmem:[#allocation4 + $0x10] sm:$0xff] }
 0x315   : > { %861 = vmax.xlane.f32.xlu1 %v860_v2 }
 0x323   : > { %744 = vrot.lane.b32.xlu0 %v1288_v4, %s1365_s27 }
 0x327   : > { %510 = vperm.xlu0 %1283, %v1537_v5  }
 0x392   : > { %v576_v7 = vpop.xlane.xlu1 %575 }
 0x393   : > { %v577_v8 = vmax.f32 %v573_v6, %v576_v7  ;;  %v650_v7 = vld [vmem:[#allocation5 + $0x8] sm:$0xff] }
 0x395   : > { %659 = vst.msk [vmem:[#allocation3 + $0x8] sm:$0xff] %vm338_vm0, %v577_v8  ;;  %583 = vperm.xlu1 %1284, %v577_v8   ;;  %v578_v23 = vsub.f32 %v573_v6, %v577_v8 }
 0x397   : > { %v579_v25 = vmul.f32 1.442695, %v578_v23 }
 0x399   : > { %1295 = vpow2.f32 %v579_v25 }
 0x39a   : > { %v719_v11 = vpop.xlane.xlu0 %718 }
 0x39b   : > { %v720_v12 = vmax.f32 %v716_v9, %v719_v11 }
 0x39d   : > { %802 = vst.msk [vmem:[#allocation3 + $0x10] sm:$0xff] %vm338_vm0, %v720_v12  ;;  %726 = vperm.xlu1 %1284, %v720_v12   ;;  %v721_v26 = vsub.f32 %v716_v9, %v720_v12 }
 0x39e   : > { %v745_v13 = vpop.permute.xlu0 %744 }
 0x39f   : > { %v722_v27 = vmul.f32 1.442695, %v721_v26  ;;  %v750_v47 = vsel %vm463_vm4, %v745_v13, 0 }
 0x3a1   : > { %1297 = vpow2.f32 %v722_v27 }
 0x3a2   : > { %v862_v15 = vpop.xlane.xlu1 %861 }
 0x3a3   : > { %v863_v16 = vmax.f32 %v859_v14, %v862_v15  ;;  %v1296_v30 = vpop.eup %1295 }
 0x3a4   : > { %v591_v61 = vmul.f32 %v1296_v30, %v590_v60 }
 0x3a5   : > { %945 = vst.msk [vmem:[#allocation3 + $0x18] sm:$0xff] %vm338_vm0, %v863_v16  ;;  %869 = vperm.xlu1 %1284, %v863_v16   ;;  %v864_v28 = vsub.f32 %v859_v14, %v863_v16  ;;  %v793_v16 = vld [vmem:[#allocation5 + $0x10] sm:$0xff] }
 0x3a6   : > { %v511_v19 = vpop.permute.xlu0 %510 }
 0x3a7   : > { %v513_v20 = vmul.f32 %v511_v19, %v507_v17  ;;  %v865_v29 = vmul.f32 1.442695, %v864_v28 }
 0x3a9   : > { %v514_v21 = vadd.f32 %v513_v20, %v501_v45  ;;  %601 = vrot.lane.b32.xlu1 %v1289_v18, %s1364_s26  ;;  %1299 = vpow2.f32 %v865_v29 }
 0x3ab   : > { %515 = vst.msk [vmem:[#allocation5] sm:$0xff] %vm347_vm1, %v514_v21  ;;  %v1298_v31 = vpop.eup %1297 }
 0x3ac   : > { %v734_v1 = vmul.f32 %v1298_v31, %v733_v0 }
 0x3ad   : > { %887 = vrot.lane.b32.xlu1 %v1290_v22, %s1366_s28 }
 0x3b3   : > { %v1300_v32 = vpop.eup %1299 }
 0x3b4   : > { %v877_v4 = vmul.f32 %v1300_v32, %v876_v3 }
 0x3d1   : > { %454 = vadd.xlane.f32.xlu1 %v453_v24  ;;  %v936_v24 = vld [vmem:[#allocation5 + $0x18] sm:$0xff] }
 0x3e2   : > { %653 = vperm.xlu1 %1284, %v1296_v30  }
 0x3e6   : > { %796 = vperm.xlu1 %1284, %v1298_v31  }
 0x3ea   : > { %939 = vperm.xlu1 %1284, %v1300_v32  }
 0x414   : > { %v584_v33 = vpop.permute.xlu1 %583 }
 0x415   : > { %v586_v34 = vsub.f32 %v1521_v50, %v584_v33 }
 0x417   : > { %v587_v36 = vmul.f32 1.442695, %v586_v34 }
 0x419   : > { %1301 = vpow2.f32 %v587_v36 }
 0x41c   : > { %v727_v35 = vpop.permute.xlu1 %726 }
 0x41d   : > { %v729_v37 = vsub.f32 %v1526_v56, %v727_v35  ;;  %v451_v56 = vld [vmem:[#allocation4] sm:$0xff] }
 0x41e   : > { %v452_v57 = vmul.f32 %v1537_v5, %v451_v56 }
 0x41f   : > { %v730_v38 = vmul.f32 1.442695, %v729_v37 }
 0x421   : > { %1303 = vpow2.f32 %v730_v38 }
 0x423   : > { %v1302_v39 = vpop.eup %1301 }
 0x424   : > { %v870_v40 = vpop.permute.xlu1 %869  ;;  %v592_v41 = vsel %vm347_vm1, %v1302_v39, 0.0  ;;  %v597_v48 = vpack.c.bf16 %v1302_v39, %v1302_v39 }
 0x425   : > { %v872_v42 = vsub.f32 %v1531_v62, %v870_v40  ;;  %593 = vadd.xlane.f32.xlu0 %v592_v41 }
 0x427   : > { %v873_v43 = vmul.f32 1.442695, %v872_v42 }
 0x428   : > { %v602_v44 = vpop.permute.xlu1 %601 }
 0x429   : > { %1305 = vpow2.f32 %v873_v43  ;;  %v607_v45 = vsel %vm463_vm4, %v602_v44, 0 }
 0x42a   : > { %1214 = vmatpush3.bf16.msra.mxu0 %v607_v45 }
 0x42b   : > { %v1304_v46 = vpop.eup %1303  ;;  %1225 = vmatprep.subr.bf16.mxu0 %v1361_v10 }
 0x42c   : > { %v735_v49 = vsel %vm347_vm1, %v1304_v46, 0.0  ;;  %v888_v50 = vpop.permute.xlu1 %887  ;;  %v740_v52 = vpack.c.bf16 %v1304_v46, %v1304_v46 }
 0x42d   : > { %1216 = vmatmul.mubr.msk.bf16.vlgmr.msra.gmra.mrb[4].mxu0 %vm347_vm1, %v597_v48  ;;  %736 = vadd.xlane.f32.xlu0 %v735_v49  ;;  %v893_v53 = vsel %vm463_vm4, %v888_v50, 0 }
 0x42e   : > { %1226 = vmatpush3.bf16.msra.mxu0 %v750_v47  ;;  %1227 = vmatprep.mubr.msk.bf16.mxu0 %vm1362_vm3, %v1361_v10 }
 0x42f   : > { %1237 = vmatprep.subr.bf16.mxu0 %v1361_v10 }
 0x433   : > { %v1306_v51 = vpop.eup %1305 }
 0x434   : > { %v878_v54 = vsel %vm347_vm1, %v1306_v51, 0.0  ;;  %v883_v55 = vpack.c.bf16 %v1306_v51, %v1306_v51 }
 0x435   : > { %1228 = vmatmul.mubr.msk.bf16.vlgmr.msra.gmra.mrb[8].mxu0 %vm347_vm1, %v740_v52  ;;  %879 = vadd.xlane.f32.xlu0 %v878_v54 }
 0x436   : > { %1238 = vmatpush3.bf16.msra.mxu0 %v893_v53  ;;  %1239 = vmatprep.mubr.msk.bf16.mxu0 %vm1362_vm3, %v1361_v10 }
 0x43d   : > { %1240 = vmatmul.mubr.msk.bf16.vlgmr.msra.gmra.mrb[12].mxu0 %vm347_vm1, %v883_v55 }
 0x45e   : > { %v455_v58 = vpop.xlane.xlu1 %454 }
 0x45f   : > { %v456_v59 = vadd.f32 %v455_v58, %v452_v57 }
 0x461   : > { %458 = vst.msk [vmem:[#allocation4] sm:$0xff] %vm338_vm0, %v456_v59 }
 0x462   : > { %v654_v8 = vpop.permute.xlu1 %653 }
 0x463   : > { %v656_v9 = vmul.f32 %v654_v8, %v650_v7 }
 0x466   : > { %v797_v17 = vpop.permute.xlu1 %796 }
 0x467   : > { %v799_v18 = vmul.f32 %v797_v17, %v793_v16 }
 0x46a   : > { %v940_v25 = vpop.permute.xlu1 %939 }
 0x46b   : > { %v942_v26 = vmul.f32 %v940_v25, %v936_v24 }
 0x4b2   : > { %v594_v62 = vpop.xlane.xlu0 %593 }
 0x4b3   : > { %v595_v63 = vadd.f32 %v594_v62, %v591_v61 }
 0x4b5   : > { %596 = vst.msk [vmem:[#allocation4 + $0x8] sm:$0xff] %vm338_vm0, %v595_v63 }
 0x4ba   : > { %v737_v2 = vpop.xlane.xlu0 %736 }
 0x4bb   : > { %v738_v10 = vadd.f32 %v737_v2, %v734_v1 }
 0x4bd   : > { %739 = vst.msk [vmem:[#allocation4 + $0x10] sm:$0xff] %vm338_vm0, %v738_v10 }
 0x4c2   : > { %v880_v6 = vpop.xlane.xlu0 %879 }
 0x4c3   : > { %v881_v5 = vadd.f32 %v880_v6, %v877_v4 }
 0x4c5   : > { %882 = vst.msk [vmem:[#allocation4 + $0x18] sm:$0xff] %vm338_vm0, %v881_v5 }
 0x500   : > { %v643_v11 = vpop.f32.mrb[4].mxu0 }
 0x501   : > { %v657_v12 = vadd.f32 %v656_v9, %v643_v11  ;;  %v1217_v13 = vpop.f32.mrb[5].mxu0 }
 0x502   : > { %v646_v14 = vpop.f32.mrb[6].mxu0 }
 0x503   : > { %658 = vst.msk [vmem:[#allocation5 + $0x8] sm:$0xff] %vm347_vm1, %v657_v12  ;;  %v1218_v15 = vpop.f32.mrb[7].mxu0 }
 0x508   : > { %v786_v19 = vpop.f32.mrb[8].mxu0 }
 0x509   : > { %v800_v20 = vadd.f32 %v799_v18, %v786_v19  ;;  %v1229_v21 = vpop.f32.mrb[9].mxu0 }
 0x50a   : > { %v789_v22 = vpop.f32.mrb[10].mxu0 }
 0x50b   : > { %801 = vst.msk [vmem:[#allocation5 + $0x10] sm:$0xff] %vm347_vm1, %v800_v20  ;;  %v1230_v23 = vpop.f32.mrb[11].mxu0 }
 0x510   : > { %v929_v27 = vpop.f32.mrb[12].mxu0 }
 0x511   : > { %v943_v28 = vadd.f32 %v942_v26, %v929_v27  ;;  %v1241_v29 = vpop.f32.mrb[13].mxu0 }
 0x512   : > { %v932_v30 = vpop.f32.mrb[14].mxu0 }
 0x513   : > { %944 = vst.msk [vmem:[#allocation5 + $0x18] sm:$0xff] %vm347_vm1, %v943_v28  ;;  %v1242_v31 = vpop.f32.mrb[15].mxu0 }
 0x514 PF: > { %v962_v32 = vld [vmem:[#allocation4 + $0x8] sm:$0xff]  ;;  %v1002_v33 = vld [vmem:[#allocation4 + $0x18] sm:$0xff]  ;;  %v982_v34 = vld [vmem:[#allocation4 + $0x10] sm:$0xff]  ;;  %v1367_v36 = vmov 0   ;;  %s1368_s29 = smov 8   ;;  %s1369_s30 = smov 16  }
 0x515   : > { %1307 = vset.pattern.permute.xlu0 %v1367_v36  ;;  %1308 = vset.pattern.permute.xlu1 %v1367_v36  ;;  %1309 = vrcp.f32 %v962_v32  ;;  %v949_v35 = vld [vmem:[#allocation4] sm:$0xff]  ;;  %v965_v41 = vld [vmem:[#allocation5 + $0x8] sm:$0xff]  ;;  %v985_v47 = vld [vmem:[#allocation5 + $0x10] sm:$0xff]  ;;  %s1370_s6 = smov 24   ;;  %vm979_vm5 = vcmask 126016   ;;  %vm999_vm6 = vcmask 191616  }
 0x516   : > { %1311 = vrcp.f32 %v1002_v33  ;;  %v951_v49 = vld [vmem:[#allocation5] sm:$0xff]  ;;  %vm1019_vm7 = vcmask 257216  }
 0x517   : > { %1313 = vrcp.f32 %v982_v34 }
 0x518   : > { %1315 = vrcp.f32 %v949_v35 }
 0x51a   : > { %v1005_v42 = vld [vmem:[#allocation5 + $0x18] sm:$0xff] }
 0x51f   : > { %v1310_v37 = vpop.eup %1309 }
 0x520   : > { %v1312_v38 = vpop.eup %1311  ;;  %968 = vperm.xlu0 %1307, %v1310_v37  }
 0x521   : > { %v1314_v39 = vpop.eup %1313  ;;  %1008 = vperm.xlu1 %1308, %v1312_v38  }
 0x522   : > { %v1316_v40 = vpop.eup %1315 }
 0x524   : > { %988 = vperm.xlu0 %1307, %v1314_v39  }
 0x525   : > { %954 = vperm.xlu1 %1308, %v1316_v40  }
 0x59f   : > { %v969_v43 = vpop.permute.xlu0 %968 }
 0x5a0   : > { %v971_v44 = vmul.f32 %v969_v43, %v965_v41  ;;  %v1009_v45 = vpop.permute.xlu1 %1008 }
 0x5a1   : > { %v1011_v46 = vmul.f32 %v1009_v45, %v1005_v42 }
 0x5a2   : > { %v1176_v48 = vpack.c.bf16 %v971_v44, %v971_v44 }
 0x5a3   : > { %v989_v50 = vpop.permute.xlu0 %988  ;;  %v1178_v51 = vpack.c.bf16 %v1011_v46, %v1011_v46 }
 0x5a4   : > { %v991_v52 = vmul.f32 %v989_v50, %v985_v47  ;;  %976 = vrot.lane.b32.xlu0 %v1176_v48, %s1368_s29  ;;  %v955_v53 = vpop.permute.xlu1 %954 }
 0x5a5   : > { %v957_v54 = vmul.f32 %v955_v53, %v951_v49 }
 0x5a6   : > { %v1177_v55 = vpack.c.bf16 %v991_v52, %v991_v52 }
 0x5a7   : > { %v958_v56 = vpack.c.bf16 %v957_v54, %v957_v54 }
 0x5a8   : > { %996 = vrot.lane.b32.xlu1 %v1177_v55, %s1369_s30  ;;  %1016 = vrot.lane.b32.xlu0 %v1178_v51, %s1370_s6 }
 0x5a9   : > { %960 = vst.msk [vmem:[%s1460_s18] sm:$0xf] %vm353_vm2, %v958_v56 }
 0x616   : > { %v977_v57 = vpop.permute.xlu0 %976 }
 0x617   : > { %980 = vst.msk [vmem:[%s1460_s18] sm:$0xf] %vm979_vm5, %v977_v57 }
 0x61a   : > { %v997_v58 = vpop.permute.xlu1 %996  ;;  %v1017_v59 = vpop.permute.xlu0 %1016 }
 0x61b   : > { %1000 = vst.msk [vmem:[%s1460_s18] sm:$0xf] %vm999_vm6, %v997_v58 }
 0x61c   : > { %1020 = vst.msk [vmem:[%s1460_s18] sm:$0xf] %vm1019_vm7, %v1017_v59 }
 0x61d PF: > { %s21_s25 = sadd.s32 1, %s1353_s25   ;;  %s1596_s23 = smov %s1349_s24 }
 0x61e   : > { %p18_p11 = scmp.ge.s32.totalorder %s21_s25, 4   ;;  %s1597_s24 = smov %s1599_s0 }
 0x620   :  { %20 = sbr.rel (!%p18_p11) target bundleno = 17 (0x11), region = 108 }

</bundles_post_ra>
